<compile_context>
chip_gen: v7x
topology: tpu7x:2x2x1
jax: 0.10.0
libtpu: 0.0.40
codegen_flags: <defaults>
</compile_context>

<pallas_src>
import functools

import jax
import jax.numpy as jnp
import numpy as np
from jax import lax
from jax.experimental import pallas as pl
from jax.experimental.pallas import tpu as pltpu

LN_EPS = 1e-5
GELU_C = 0.7978845608028654   # sqrt(2/pi)
NEG_MASK = -1e30              # large-negative (instead of -inf) keeps VPU fast path


def _layernorm(h, w, b):
    """LayerNorm with f32 statistics (h must already be f32)."""
    mean = jnp.mean(h, axis=-1, keepdims=True)
    var = jnp.mean((h - mean) ** 2, axis=-1, keepdims=True)
    return (h - mean) * lax.rsqrt(var + LN_EPS) * w + b


def gpt2_block_kernel(
    # inputs
    x_ref,                       # (1, S, D)  full sequence (resident per batch row)
    ln1w_ref, ln1b_ref,          # (1, D)
    wqkv_ref, bqkv_ref,          # (D, 3D), (1, 3D)
    wattn_ref, battn_ref,        # (D, D),  (1, D)
    ln2w_ref, ln2b_ref,          # (1, D)
    wfc_ref, bfc_ref,            # (D, 4D), (1, 4D)
    wmproj_ref, bmproj_ref,      # (4D, D), (1, D)
    # outputs
    out_ref,                     # (1, TQ, D)
    # scratch (persists across grid steps)
    q_scr, k_scr, v_scr,         # (H, S, hs)  per-batch head-split Q/K/V cache
    attn_scr,                    # (TQ, D)     assembled attention output
    m_scr, l_scr,                # (H, TQ, 1)  f32 online-softmax stats
    acc_scr,                     # (H, TQ, hs) f32 attention accumulator
    *, n_head: int, tq: int,
):
    qi = pl.program_id(1)
    S = x_ref.shape[1]
    D = x_ref.shape[2]
    hs = D // n_head
    cdt = wqkv_ref.dtype          # MXU compute dtype (f32 or bf16)
    f32 = jnp.float32
    scale = 1.0 / float(hs) ** 0.5

    # ---- once per batch row (first q tile): ln_1 + fused QKV over the whole seq ----
    @pl.when(qi == 0)
    def _():
        xf = x_ref[0].astype(f32)                                    # (S, D)
        hf = _layernorm(xf, ln1w_ref[0], ln1b_ref[0]).astype(cdt)
        qkv = (jnp.dot(hf, wqkv_ref[...], preferred_element_type=f32)
               + bqkv_ref[0]).astype(cdt)                            # (S, 3D)
        for h in range(n_head):                                      # head-split copies
            q_scr[h] = qkv[:, h * hs:(h + 1) * hs]
            k_scr[h] = qkv[:, D + h * hs:D + (h + 1) * hs]
            v_scr[h] = qkv[:, 2 * D + h * hs:2 * D + (h + 1) * hs]

    # ---- per q-tile: flash-style causal attention over KV blocks ------------------
    q_off = pl.multiple_of(qi * tq, tq)
    q3 = q_scr[:, pl.ds(q_off, tq), :]                               # (H, TQ, hs)

    m_scr[...] = jnp.full_like(m_scr, NEG_MASK)
    l_scr[...] = jnp.zeros_like(l_scr)
    acc_scr[...] = jnp.zeros_like(acc_scr)

    row = q_off + lax.broadcasted_iota(jnp.int32, (n_head, tq, tq), 1)

    @pl.loop(0, qi + 1)   # causal skip: only KV blocks at or before the diagonal
    def _(j):
        k_off = pl.multiple_of(j * tq, tq)
        k3 = k_scr[:, pl.ds(k_off, tq), :]                           # (H, TK, hs)
        v3 = v_scr[:, pl.ds(k_off, tq), :]

        s = jnp.einsum('hqd,hkd->hqk', q3, k3,
                       preferred_element_type=f32) * scale           # (H, TQ, TK) f32
        col = k_off + lax.broadcasted_iota(jnp.int32, s.shape, 2)
        s = jnp.where(col <= row, s, NEG_MASK)                       # no-op for j < qi

        m_new = jnp.maximum(m_scr[...], jnp.max(s, axis=-1, keepdims=True))
        alpha = jnp.exp(m_scr[...] - m_new)
        p = jnp.exp(s - m_new)
        l_scr[...] = alpha * l_scr[...] + jnp.sum(p, axis=-1, keepdims=True)
        acc_scr[...] = alpha * acc_scr[...] + jnp.einsum(
            'hqk,hkd->hqd', p.astype(cdt), v3, preferred_element_type=f32)
        m_scr[...] = m_new

    o3 = acc_scr[...] * pl.reciprocal(l_scr[...], approx=True)       # (H, TQ, hs) f32

    # assemble heads at static lane offsets (no list-append + concatenate)
    for h in range(n_head):
        attn_scr[:, h * hs:(h + 1) * hs] = o3[h].astype(cdt)

    attn = (jnp.dot(attn_scr[...], wattn_ref[...], preferred_element_type=f32)
            + battn_ref[0])                                          # (TQ, D) f32
    x_t = x_ref[0, pl.ds(q_off, tq), :].astype(f32)                  # residual tile
    x1 = x_t + attn                                                  # first residual

    # ---- ln_2 + MLP ---------------------------------------------------------------
    h2 = _layernorm(x1, ln2w_ref[0], ln2b_ref[0]).astype(cdt)
    m1 = jnp.dot(h2, wfc_ref[...], preferred_element_type=f32) + bfc_ref[0]
    # GELU (tanh approximation), matches nn.GELU(approximate='tanh')
    g = 0.5 * m1 * (1.0 + jnp.tanh(GELU_C * (m1 + 0.044715 * m1 * m1 * m1)))
    y = (jnp.dot(g.astype(cdt), wmproj_ref[...], preferred_element_type=f32)
         + bmproj_ref[0])

    out_ref[0] = (x1 + y).astype(out_ref.dtype)                      # second residual


def gpt2_block(x, params, n_head, *, block_q=128, compute_dtype=None):
    B, S, D = x.shape
    assert D % n_head == 0
    hs = D // n_head
    if compute_dtype is None:
        compute_dtype = x.dtype
    tq = min(block_q, S)
    assert S % tq == 0, "sequence length must be a multiple of the q tile"
    assert tq % 8 == 0 or tq == S, "q tile must be a multiple of 8 (sublane) or full S"

    (ln1w, ln1b, wqkv, bqkv, wattn, battn,
     ln2w, ln2b, wfc, bfc, wmproj, bmproj) = params

    # Only the MXU weight operands are cast to the compute dtype (e.g. bf16);
    # biases, LayerNorm params, residuals and all accumulations stay f32.
    wqkv_c = wqkv.astype(compute_dtype)
    wattn_c = wattn.astype(compute_dtype)
    wfc_c = wfc.astype(compute_dtype)
    wmproj_c = wmproj.astype(compute_dtype)

    kernel = functools.partial(gpt2_block_kernel, n_head=n_head, tq=tq)

    def wspec(a):
        # constant block index -> weight stays resident in VMEM across the grid
        return pl.BlockSpec(a.shape, lambda b, q: (0, 0))

    grid = (B, S // tq)
    return pl.pallas_call(
        kernel,
        out_shape=jax.ShapeDtypeStruct((B, S, D), x.dtype),
        grid_spec=pltpu.PrefetchScalarGridSpec(
            num_scalar_prefetch=0,
            grid=grid,
            in_specs=[
                pl.BlockSpec((1, S, D), lambda b, q: (b, 0, 0)),    # x: full seq per batch
                wspec(ln1w), wspec(ln1b),
                wspec(wqkv_c), wspec(bqkv),
                wspec(wattn_c), wspec(battn),
                wspec(ln2w), wspec(ln2b),
                wspec(wfc_c), wspec(bfc),
                wspec(wmproj_c), wspec(bmproj),
            ],
            out_specs=pl.BlockSpec((1, tq, D), lambda b, q: (b, q, 0)),
            scratch_shapes=[
                pltpu.VMEM((n_head, S, hs), compute_dtype),   # Q cache (per batch row)
                pltpu.VMEM((n_head, S, hs), compute_dtype),   # K cache
                pltpu.VMEM((n_head, S, hs), compute_dtype),   # V cache
                pltpu.VMEM((tq, D), compute_dtype),           # assembled attention out
                pltpu.VMEM((n_head, tq, 1), jnp.float32),     # online-softmax max
                pltpu.VMEM((n_head, tq, 1), jnp.float32),     # online-softmax sum
                pltpu.VMEM((n_head, tq, hs), jnp.float32),    # attention accumulator
            ],
        ),
        compiler_params=pltpu.CompilerParams(
            dimension_semantics=("parallel", "arbitrary"),
            vmem_limit_bytes=64 * 1024 * 1024,
        ),
    )(x, ln1w, ln1b, wqkv_c, bqkv, wattn_c, battn,
      ln2w, ln2b, wfc_c, bfc, wmproj_c, bmproj)


def gpt2_block_ref(x, params, n_head):
    """Pure-JAX f32 reference for correctness checking."""
    (ln1w, ln1b, wqkv, bqkv, wattn, battn,
     ln2w, ln2b, wfc, bfc, wmproj, bmproj) = params
    B, S, D = x.shape
    hs = D // n_head

    def ln(h, w, b):
        m = jnp.mean(h, -1, keepdims=True)
        v = jnp.mean((h - m) ** 2, -1, keepdims=True)
        return (h - m) / jnp.sqrt(v + LN_EPS) * w[0] + b[0]

    h = ln(x, ln1w, ln1b)
    qkv = h @ wqkv + bqkv[0]
    q, k, v = jnp.split(qkv, 3, axis=-1)
    reshape_heads = lambda t: t.reshape(B, S, n_head, hs).transpose(0, 2, 1, 3)
    q, k, v = map(reshape_heads, (q, k, v))
    scores = jnp.einsum('bhqd,bhkd->bhqk', q, k) / (hs ** 0.5)
    mask = jnp.tril(jnp.ones((S, S), bool))
    scores = jnp.where(mask, scores, -jnp.inf)
    w_ = jax.nn.softmax(scores, axis=-1)
    attn = jnp.einsum('bhqk,bhkd->bhqd', w_, v).transpose(0, 2, 1, 3).reshape(B, S, D)
    attn = attn @ wattn + battn[0]
    x = x + attn
    h = ln(x, ln2w, ln2b)
    h = h @ wfc + bfc[0]
    h = 0.5 * h * (1.0 + jnp.tanh(GELU_C * (h + 0.044715 * h ** 3)))
    h = h @ wmproj + bmproj[0]
    return x + h


if __name__ == "__main__":
    # small GPT2 config: batch=2, seq=16, n_embd=32, n_head=4, head_size=8
    # (seq=16 with block_q=8 exercises the multi-tile grid, the persistent QKV
    #  scratch and the dynamic-trip-count causal KV loop)
    B, S, D, n_head = 2, 16, 32, 4

    key = jax.random.PRNGKey(0)
    ks = jax.random.split(key, 16)
    f32 = jnp.float32

    x = jax.random.normal(ks[0], (B, S, D), dtype=f32)

    params = (
        jnp.ones((1, D), f32),                                              # ln_1 weight
        jnp.zeros((1, D), f32),                                             # ln_1 bias
        0.1 * jax.random.normal(ks[1], (D, 3 * D), dtype=f32),              # c_attn W
        0.1 * jax.random.normal(ks[2], (1, 3 * D), dtype=f32),              # c_attn b
        0.1 * jax.random.normal(ks[3], (D, D), dtype=f32),                  # attn c_proj W
        0.1 * jax.random.normal(ks[4], (1, D), dtype=f32),                  # attn c_proj b
        jnp.ones((1, D), f32),                                              # ln_2 weight
        jnp.zeros((1, D), f32),                                             # ln_2 bias
        0.1 * jax.random.normal(ks[5], (D, 4 * D), dtype=f32),              # mlp c_fc W
        0.1 * jax.random.normal(ks[6], (1, 4 * D), dtype=f32),              # mlp c_fc b
        0.1 * jax.random.normal(ks[7], (4 * D, D), dtype=f32),              # mlp c_proj W
        0.1 * jax.random.normal(ks[8], (1, D), dtype=f32),                  # mlp c_proj b
    )

    ref = gpt2_block_ref(x, params, n_head)

    # f32 compute path (tolerance accounts for the approx softmax reciprocal)
    out = gpt2_block(x, params, n_head, block_q=8)
    out = jax.block_until_ready(out)
    np.testing.assert_allclose(np.asarray(out), np.asarray(ref), rtol=5e-3, atol=5e-3)

    # bf16 MXU path (f32 accumulation / LN / softmax stats), loose tolerance vs f32 ref
    out_bf16 = gpt2_block(x, params, n_head, block_q=8, compute_dtype=jnp.bfloat16)
    out_bf16 = jax.block_until_ready(out_bf16)
    np.testing.assert_allclose(np.asarray(out_bf16), np.asarray(ref), rtol=5e-2, atol=5e-2)

    print("KERNEL_OK")
</pallas_src>

<mosaic_0001>
module attributes {stable_mosaic.version = 11 : i64} {
  func.func @gpt2_block_kernel(%arg0: i32, %arg1: i32, %arg2: memref<1x16x32xf32, #tpu.memory_space<vmem>>, %arg3: memref<1x32xf32, #tpu.memory_space<vmem>>, %arg4: memref<1x32xf32, #tpu.memory_space<vmem>>, %arg5: memref<32x96xf32, #tpu.memory_space<vmem>>, %arg6: memref<1x96xf32, #tpu.memory_space<vmem>>, %arg7: memref<32x32xf32, #tpu.memory_space<vmem>>, %arg8: memref<1x32xf32, #tpu.memory_space<vmem>>, %arg9: memref<1x32xf32, #tpu.memory_space<vmem>>, %arg10: memref<1x32xf32, #tpu.memory_space<vmem>>, %arg11: memref<32x128xf32, #tpu.memory_space<vmem>>, %arg12: memref<1x128xf32, #tpu.memory_space<vmem>>, %arg13: memref<128x32xf32, #tpu.memory_space<vmem>>, %arg14: memref<1x32xf32, #tpu.memory_space<vmem>>, %arg15: memref<1x8x32xf32, #tpu.memory_space<vmem>>, %arg16: memref<4x16x8xf32, #tpu.memory_space<vmem>>, %arg17: memref<4x16x8xf32, #tpu.memory_space<vmem>>, %arg18: memref<4x16x8xf32, #tpu.memory_space<vmem>>, %arg19: memref<8x32xf32, #tpu.memory_space<vmem>>, %arg20: memref<4x8x1xf32, #tpu.memory_space<vmem>>, %arg21: memref<4x8x1xf32, #tpu.memory_space<vmem>>, %arg22: memref<4x8x8xf32, #tpu.memory_space<vmem>>) attributes {dimension_semantics = [#tpu.dimension_semantics<parallel>, #tpu.dimension_semantics<arbitrary>], iteration_bounds = array<i64: 2, 2>, scalar_prefetch = 0 : i64, scratch_operands = 7 : i64, tpu.core_type = #tpu.core_type<tc>, window_params = [{transform_indices = @transform_0, window_bounds = array<i64: 1, 16, 32>}, {pipeline_mode = #tpu.pipeline_mode<synchronous>, transform_indices = @transform_1, window_bounds = array<i64: 1, 32>}, {pipeline_mode = #tpu.pipeline_mode<synchronous>, transform_indices = @transform_2, window_bounds = array<i64: 1, 32>}, {pipeline_mode = #tpu.pipeline_mode<synchronous>, transform_indices = @transform_3, window_bounds = array<i64: 32, 96>}, {pipeline_mode = #tpu.pipeline_mode<synchronous>, transform_indices = @transform_4, window_bounds = array<i64: 1, 96>}, {pipeline_mode = #tpu.pipeline_mode<synchronous>, transform_indices = @transform_5, window_bounds = array<i64: 32, 32>}, {pipeline_mode = #tpu.pipeline_mode<synchronous>, transform_indices = @transform_6, window_bounds = array<i64: 1, 32>}, {pipeline_mode = #tpu.pipeline_mode<synchronous>, transform_indices = @transform_7, window_bounds = array<i64: 1, 32>}, {pipeline_mode = #tpu.pipeline_mode<synchronous>, transform_indices = @transform_8, window_bounds = array<i64: 1, 32>}, {pipeline_mode = #tpu.pipeline_mode<synchronous>, transform_indices = @transform_9, window_bounds = array<i64: 32, 128>}, {pipeline_mode = #tpu.pipeline_mode<synchronous>, transform_indices = @transform_10, window_bounds = array<i64: 1, 128>}, {pipeline_mode = #tpu.pipeline_mode<synchronous>, transform_indices = @transform_11, window_bounds = array<i64: 128, 32>}, {pipeline_mode = #tpu.pipeline_mode<synchronous>, transform_indices = @transform_12, window_bounds = array<i64: 1, 32>}, {transform_indices = @transform_13, window_bounds = array<i64: 1, 8, 32>}]} {
    %c0_i32 = arith.constant 0 : i32
    %0 = arith.cmpi eq, %arg1, %c0_i32 : i32
    %1 = arith.extui %0 : i1 to i32
    %c0_i32_0 = arith.constant 0 : i32
    %2 = arith.cmpi ne, %1, %c0_i32_0 : i32
    scf.if %2 {
      %c0_67 = arith.constant 0 : index
      %c0_68 = arith.constant 0 : index
      %c0_69 = arith.constant 0 : index
      %111 = vector.load %arg2[%c0_67, %c0_68, %c0_69] : memref<1x16x32xf32, #tpu.memory_space<vmem>>, vector<1x16x32xf32>
      %112 = vector.shape_cast %111 : vector<1x16x32xf32> to vector<16x32xf32>
      %c0_70 = arith.constant 0 : index
      %c0_71 = arith.constant 0 : index
      %113 = vector.load %arg3[%c0_70, %c0_71] : memref<1x32xf32, #tpu.memory_space<vmem>>, vector<1x32xf32>
      %114 = vector.shape_cast %113 : vector<1x32xf32> to vector<32xf32>
      %c0_72 = arith.constant 0 : index
      %c0_73 = arith.constant 0 : index
      %115 = vector.load %arg4[%c0_72, %c0_73] : memref<1x32xf32, #tpu.memory_space<vmem>>, vector<1x32xf32>
      %116 = vector.shape_cast %115 : vector<1x32xf32> to vector<32xf32>
      %cst_74 = arith.constant dense<0.000000e+00> : vector<16xf32>
      %117 = vector.multi_reduction <add>, %112, %cst_74 [1] : vector<16x32xf32> to vector<16xf32>
      %118 = vector.shape_cast %117 : vector<16xf32> to vector<16x1xf32>
      %cst_75 = arith.constant 3.200000e+01 : f32
      %119 = vector.broadcast %cst_75 : f32 to vector<16x1xf32>
      %120 = arith.divf %118, %119 : vector<16x1xf32>
      %121 = vector.broadcast %120 : vector<16x1xf32> to vector<16x32xf32>
      %122 = arith.subf %112, %121 : vector<16x32xf32>
      %123 = arith.mulf %122, %122 : vector<16x32xf32>
      %cst_76 = arith.constant dense<0.000000e+00> : vector<16xf32>
      %124 = vector.multi_reduction <add>, %123, %cst_76 [1] : vector<16x32xf32> to vector<16xf32>
      %125 = vector.shape_cast %124 : vector<16xf32> to vector<16x1xf32>
      %cst_77 = arith.constant 3.200000e+01 : f32
      %126 = vector.broadcast %cst_77 : f32 to vector<16x1xf32>
      %127 = arith.divf %125, %126 : vector<16x1xf32>
      %128 = vector.broadcast %120 : vector<16x1xf32> to vector<16x32xf32>
      %129 = arith.subf %112, %128 : vector<16x32xf32>
      %cst_78 = arith.constant 9.99999974E-6 : f32
      %130 = vector.broadcast %cst_78 : f32 to vector<16x1xf32>
      %131 = arith.addf %127, %130 : vector<16x1xf32>
      %132 = math.rsqrt %131 : vector<16x1xf32>
      %133 = vector.broadcast %132 : vector<16x1xf32> to vector<16x32xf32>
      %134 = arith.mulf %129, %133 : vector<16x32xf32>
      %135 = vector.shape_cast %114 : vector<32xf32> to vector<1x32xf32>
      %136 = vector.broadcast %135 : vector<1x32xf32> to vector<16x32xf32>
      %137 = arith.mulf %134, %136 : vector<16x32xf32>
      %138 = vector.shape_cast %116 : vector<32xf32> to vector<1x32xf32>
      %139 = vector.broadcast %138 : vector<1x32xf32> to vector<16x32xf32>
      %140 = arith.addf %137, %139 : vector<16x32xf32>
      %c0_79 = arith.constant 0 : index
      %c0_80 = arith.constant 0 : index
      %141 = vector.load %arg5[%c0_79, %c0_80] : memref<32x96xf32, #tpu.memory_space<vmem>>, vector<32x96xf32>
      %cst_81 = arith.constant dense<0.000000e+00> : vector<16x96xf32>
      %142 = tpu.matmul %140, %141, %cst_81 {dimension_numbers = #tpu.dot_dimension_numbers<[1], [0], [0], [1], [0, 0, 1, 1], [], []>} : vector<16x32xf32>, vector<32x96xf32>, vector<16x96xf32> -> vector<16x96xf32>
      %c0_82 = arith.constant 0 : index
      %c0_83 = arith.constant 0 : index
      %143 = vector.load %arg6[%c0_82, %c0_83] : memref<1x96xf32, #tpu.memory_space<vmem>>, vector<1x96xf32>
      %144 = vector.shape_cast %143 : vector<1x96xf32> to vector<96xf32>
      %145 = vector.shape_cast %144 : vector<96xf32> to vector<1x96xf32>
      %146 = vector.broadcast %145 : vector<1x96xf32> to vector<16x96xf32>
      %147 = arith.addf %142, %146 : vector<16x96xf32>
      %148 = vector.extract_strided_slice %147 {offsets = [0, 0], sizes = [16, 8], strides = [1, 1]} : vector<16x96xf32> to vector<16x8xf32>
      %c0_84 = arith.constant 0 : index
      %c0_85 = arith.constant 0 : index
      %c0_86 = arith.constant 0 : index
      %149 = vector.load %arg16[%c0_84, %c0_85, %c0_86] : memref<4x16x8xf32, #tpu.memory_space<vmem>>, vector<1x16x8xf32>
      %150 = vector.shape_cast %149 : vector<1x16x8xf32> to vector<16x8xf32>
      %151 = vector.shape_cast %148 : vector<16x8xf32> to vector<1x16x8xf32>
      tpu.vector_store %arg16[%c0_84, %c0_85, %c0_86], %151 {strides = array<i32>} : memref<4x16x8xf32, #tpu.memory_space<vmem>>, vector<1x16x8xf32>,
      %152 = vector.extract_strided_slice %147 {offsets = [0, 32], sizes = [16, 8], strides = [1, 1]} : vector<16x96xf32> to vector<16x8xf32>
      %c0_87 = arith.constant 0 : index
      %c0_88 = arith.constant 0 : index
      %c0_89 = arith.constant 0 : index
      %153 = vector.load %arg17[%c0_87, %c0_88, %c0_89] : memref<4x16x8xf32, #tpu.memory_space<vmem>>, vector<1x16x8xf32>
      %154 = vector.shape_cast %153 : vector<1x16x8xf32> to vector<16x8xf32>
      %155 = vector.shape_cast %152 : vector<16x8xf32> to vector<1x16x8xf32>
      tpu.vector_store %arg17[%c0_87, %c0_88, %c0_89], %155 {strides = array<i32>} : memref<4x16x8xf32, #tpu.memory_space<vmem>>, vector<1x16x8xf32>,
      %156 = vector.extract_strided_slice %147 {offsets = [0, 64], sizes = [16, 8], strides = [1, 1]} : vector<16x96xf32> to vector<16x8xf32>
      %c0_90 = arith.constant 0 : index
      %c0_91 = arith.constant 0 : index
      %c0_92 = arith.constant 0 : index
      %157 = vector.load %arg18[%c0_90, %c0_91, %c0_92] : memref<4x16x8xf32, #tpu.memory_space<vmem>>, vector<1x16x8xf32>
      %158 = vector.shape_cast %157 : vector<1x16x8xf32> to vector<16x8xf32>
      %159 = vector.shape_cast %156 : vector<16x8xf32> to vector<1x16x8xf32>
      tpu.vector_store %arg18[%c0_90, %c0_91, %c0_92], %159 {strides = array<i32>} : memref<4x16x8xf32, #tpu.memory_space<vmem>>, vector<1x16x8xf32>,
      %160 = vector.extract_strided_slice %147 {offsets = [0, 8], sizes = [16, 8], strides = [1, 1]} : vector<16x96xf32> to vector<16x8xf32>
      %c1 = arith.constant 1 : index
      %c0_93 = arith.constant 0 : index
      %c0_94 = arith.constant 0 : index
      %161 = vector.load %arg16[%c1, %c0_93, %c0_94] : memref<4x16x8xf32, #tpu.memory_space<vmem>>, vector<1x16x8xf32>
      %162 = vector.shape_cast %161 : vector<1x16x8xf32> to vector<16x8xf32>
      %163 = vector.shape_cast %160 : vector<16x8xf32> to vector<1x16x8xf32>
      tpu.vector_store %arg16[%c1, %c0_93, %c0_94], %163 {strides = array<i32>} : memref<4x16x8xf32, #tpu.memory_space<vmem>>, vector<1x16x8xf32>,
      %164 = vector.extract_strided_slice %147 {offsets = [0, 40], sizes = [16, 8], strides = [1, 1]} : vector<16x96xf32> to vector<16x8xf32>
      %c1_95 = arith.constant 1 : index
      %c0_96 = arith.constant 0 : index
      %c0_97 = arith.constant 0 : index
      %165 = vector.load %arg17[%c1_95, %c0_96, %c0_97] : memref<4x16x8xf32, #tpu.memory_space<vmem>>, vector<1x16x8xf32>
      %166 = vector.shape_cast %165 : vector<1x16x8xf32> to vector<16x8xf32>
      %167 = vector.shape_cast %164 : vector<16x8xf32> to vector<1x16x8xf32>
      tpu.vector_store %arg17[%c1_95, %c0_96, %c0_97], %167 {strides = array<i32>} : memref<4x16x8xf32, #tpu.memory_space<vmem>>, vector<1x16x8xf32>,
      %168 = vector.extract_strided_slice %147 {offsets = [0, 72], sizes = [16, 8], strides = [1, 1]} : vector<16x96xf32> to vector<16x8xf32>
      %c1_98 = arith.constant 1 : index
      %c0_99 = arith.constant 0 : index
      %c0_100 = arith.constant 0 : index
      %169 = vector.load %arg18[%c1_98, %c0_99, %c0_100] : memref<4x16x8xf32, #tpu.memory_space<vmem>>, vector<1x16x8xf32>
      %170 = vector.shape_cast %169 : vector<1x16x8xf32> to vector<16x8xf32>
      %171 = vector.shape_cast %168 : vector<16x8xf32> to vector<1x16x8xf32>
      tpu.vector_store %arg18[%c1_98, %c0_99, %c0_100], %171 {strides = array<i32>} : memref<4x16x8xf32, #tpu.memory_space<vmem>>, vector<1x16x8xf32>,
      %172 = vector.extract_strided_slice %147 {offsets = [0, 16], sizes = [16, 8], strides = [1, 1]} : vector<16x96xf32> to vector<16x8xf32>
      %c2 = arith.constant 2 : index
      %c0_101 = arith.constant 0 : index
      %c0_102 = arith.constant 0 : index
      %173 = vector.load %arg16[%c2, %c0_101, %c0_102] : memref<4x16x8xf32, #tpu.memory_space<vmem>>, vector<1x16x8xf32>
      %174 = vector.shape_cast %173 : vector<1x16x8xf32> to vector<16x8xf32>
      %175 = vector.shape_cast %172 : vector<16x8xf32> to vector<1x16x8xf32>
      tpu.vector_store %arg16[%c2, %c0_101, %c0_102], %175 {strides = array<i32>} : memref<4x16x8xf32, #tpu.memory_space<vmem>>, vector<1x16x8xf32>,
      %176 = vector.extract_strided_slice %147 {offsets = [0, 48], sizes = [16, 8], strides = [1, 1]} : vector<16x96xf32> to vector<16x8xf32>
      %c2_103 = arith.constant 2 : index
      %c0_104 = arith.constant 0 : index
      %c0_105 = arith.constant 0 : index
      %177 = vector.load %arg17[%c2_103, %c0_104, %c0_105] : memref<4x16x8xf32, #tpu.memory_space<vmem>>, vector<1x16x8xf32>
      %178 = vector.shape_cast %177 : vector<1x16x8xf32> to vector<16x8xf32>
      %179 = vector.shape_cast %176 : vector<16x8xf32> to vector<1x16x8xf32>
      tpu.vector_store %arg17[%c2_103, %c0_104, %c0_105], %179 {strides = array<i32>} : memref<4x16x8xf32, #tpu.memory_space<vmem>>, vector<1x16x8xf32>,
      %180 = vector.extract_strided_slice %147 {offsets = [0, 80], sizes = [16, 8], strides = [1, 1]} : vector<16x96xf32> to vector<16x8xf32>
      %c2_106 = arith.constant 2 : index
      %c0_107 = arith.constant 0 : index
      %c0_108 = arith.constant 0 : index
      %181 = vector.load %arg18[%c2_106, %c0_107, %c0_108] : memref<4x16x8xf32, #tpu.memory_space<vmem>>, vector<1x16x8xf32>
      %182 = vector.shape_cast %181 : vector<1x16x8xf32> to vector<16x8xf32>
      %183 = vector.shape_cast %180 : vector<16x8xf32> to vector<1x16x8xf32>
      tpu.vector_store %arg18[%c2_106, %c0_107, %c0_108], %183 {strides = array<i32>} : memref<4x16x8xf32, #tpu.memory_space<vmem>>, vector<1x16x8xf32>,
      %184 = vector.extract_strided_slice %147 {offsets = [0, 24], sizes = [16, 8], strides = [1, 1]} : vector<16x96xf32> to vector<16x8xf32>
      %c3 = arith.constant 3 : index
      %c0_109 = arith.constant 0 : index
      %c0_110 = arith.constant 0 : index
      %185 = vector.load %arg16[%c3, %c0_109, %c0_110] : memref<4x16x8xf32, #tpu.memory_space<vmem>>, vector<1x16x8xf32>
      %186 = vector.shape_cast %185 : vector<1x16x8xf32> to vector<16x8xf32>
      %187 = vector.shape_cast %184 : vector<16x8xf32> to vector<1x16x8xf32>
      tpu.vector_store %arg16[%c3, %c0_109, %c0_110], %187 {strides = array<i32>} : memref<4x16x8xf32, #tpu.memory_space<vmem>>, vector<1x16x8xf32>,
      %188 = vector.extract_strided_slice %147 {offsets = [0, 56], sizes = [16, 8], strides = [1, 1]} : vector<16x96xf32> to vector<16x8xf32>
      %c3_111 = arith.constant 3 : index
      %c0_112 = arith.constant 0 : index
      %c0_113 = arith.constant 0 : index
      %189 = vector.load %arg17[%c3_111, %c0_112, %c0_113] : memref<4x16x8xf32, #tpu.memory_space<vmem>>, vector<1x16x8xf32>
      %190 = vector.shape_cast %189 : vector<1x16x8xf32> to vector<16x8xf32>
      %191 = vector.shape_cast %188 : vector<16x8xf32> to vector<1x16x8xf32>
      tpu.vector_store %arg17[%c3_111, %c0_112, %c0_113], %191 {strides = array<i32>} : memref<4x16x8xf32, #tpu.memory_space<vmem>>, vector<1x16x8xf32>,
      %192 = vector.extract_strided_slice %147 {offsets = [0, 88], sizes = [16, 8], strides = [1, 1]} : vector<16x96xf32> to vector<16x8xf32>
      %c3_114 = arith.constant 3 : index
      %c0_115 = arith.constant 0 : index
      %c0_116 = arith.constant 0 : index
      %193 = vector.load %arg18[%c3_114, %c0_115, %c0_116] : memref<4x16x8xf32, #tpu.memory_space<vmem>>, vector<1x16x8xf32>
      %194 = vector.shape_cast %193 : vector<1x16x8xf32> to vector<16x8xf32>
      %195 = vector.shape_cast %192 : vector<16x8xf32> to vector<1x16x8xf32>
      tpu.vector_store %arg18[%c3_114, %c0_115, %c0_116], %195 {strides = array<i32>} : memref<4x16x8xf32, #tpu.memory_space<vmem>>, vector<1x16x8xf32>,
    } else {
    }
    %c8_i32 = arith.constant 8 : i32
    %3 = arith.muli %arg1, %c8_i32 : i32
    %4 = tpu.assume_multiple %3, 8 : i32
    %c0 = arith.constant 0 : index
    %5 = arith.index_cast %4 : i32 to index
    %c0_1 = arith.constant 0 : index
    %6 = vector.load %arg16[%c0, %5, %c0_1] : memref<4x16x8xf32, #tpu.memory_space<vmem>>, vector<4x8x8xf32>
    %cst = arith.constant -1.000000e+30 : f32
    %7 = vector.broadcast %cst : f32 to vector<4x8x1xf32>
    %c0_2 = arith.constant 0 : index
    %c0_3 = arith.constant 0 : index
    %c0_4 = arith.constant 0 : index
    %8 = vector.load %arg20[%c0_2, %c0_3, %c0_4] : memref<4x8x1xf32, #tpu.memory_space<vmem>>, vector<4x8x1xf32>
    tpu.vector_store %arg20[%c0_2, %c0_3, %c0_4], %7 {strides = array<i32>} : memref<4x8x1xf32, #tpu.memory_space<vmem>>, vector<4x8x1xf32>,
    %cst_5 = arith.constant 0.000000e+00 : f32
    %9 = vector.broadcast %cst_5 : f32 to vector<4x8x1xf32>
    %c0_6 = arith.constant 0 : index
    %c0_7 = arith.constant 0 : index
    %c0_8 = arith.constant 0 : index
    %10 = vector.load %arg21[%c0_6, %c0_7, %c0_8] : memref<4x8x1xf32, #tpu.memory_space<vmem>>, vector<4x8x1xf32>
    tpu.vector_store %arg21[%c0_6, %c0_7, %c0_8], %9 {strides = array<i32>} : memref<4x8x1xf32, #tpu.memory_space<vmem>>, vector<4x8x1xf32>,
    %cst_9 = arith.constant 0.000000e+00 : f32
    %11 = vector.broadcast %cst_9 : f32 to vector<4x8x8xf32>
    %c0_10 = arith.constant 0 : index
    %c0_11 = arith.constant 0 : index
    %c0_12 = arith.constant 0 : index
    %12 = vector.load %arg22[%c0_10, %c0_11, %c0_12] : memref<4x8x8xf32, #tpu.memory_space<vmem>>, vector<4x8x8xf32>
    tpu.vector_store %arg22[%c0_10, %c0_11, %c0_12], %11 {strides = array<i32>} : memref<4x8x8xf32, #tpu.memory_space<vmem>>, vector<4x8x8xf32>,
    %13 = tpu.iota {dimensions = array<i32: 1>} : vector<4x8x8xi32>
    %14 = vector.broadcast %4 : i32 to vector<4x8x8xi32>
    %15 = arith.addi %14, %13 : vector<4x8x8xi32>
    %c1_i32 = arith.constant 1 : i32
    %16 = arith.addi %arg1, %c1_i32 : i32
    %c0_i32_13 = arith.constant 0 : i32
    %17 = arith.subi %16, %c0_i32_13 : i32
    %c1_i32_14 = arith.constant 1 : i32
    %c1_i32_15 = arith.constant 1 : i32
    %18 = arith.subi %c1_i32_14, %c1_i32_15 : i32
    %19 = arith.addi %17, %18 : i32
    %c1_i32_16 = arith.constant 1 : i32
    %20 = arith.divsi %19, %c1_i32_16 : i32
    %c1_i32_17 = arith.constant 1 : i32
    %c0_i32_18 = arith.constant 0 : i32
    %c0_i32_19 = arith.constant 0 : i32
    %21 = arith.subi %20, %c0_i32_19 : i32
    %22 = arith.addi %c0_i32_19, %21 : i32
    %c1_i32_20 = arith.constant 1 : i32
    scf.for %arg23 = %c0_i32_19 to %22 step %c1_i32_20  : i32 {
      %111 = arith.muli %arg23, %c1_i32_17 : i32
      %112 = arith.addi %c0_i32_18, %111 : i32
      %c8_i32_67 = arith.constant 8 : i32
      %113 = arith.muli %112, %c8_i32_67 : i32
      %114 = tpu.assume_multiple %113, 8 : i32
      %c0_68 = arith.constant 0 : index
      %115 = arith.index_cast %114 : i32 to index
      %c0_69 = arith.constant 0 : index
      %116 = vector.load %arg17[%c0_68, %115, %c0_69] : memref<4x16x8xf32, #tpu.memory_space<vmem>>, vector<4x8x8xf32>
      %c0_70 = arith.constant 0 : index
      %117 = arith.index_cast %114 : i32 to index
      %c0_71 = arith.constant 0 : index
      %118 = vector.load %arg18[%c0_70, %117, %c0_71] : memref<4x16x8xf32, #tpu.memory_space<vmem>>, vector<4x8x8xf32>
      "tpu.trace_start"() <{level = 10 : i32, message = "hqd,hkd->hqk"}> : () -> ()
      %cst_72 = arith.constant dense<0.000000e+00> : vector<4x8x8xf32>
      %119 = tpu.matmul %6, %116, %cst_72 {dimension_numbers = #tpu.dot_dimension_numbers<[2], [2], [1], [1], [0, 0, 0, 1, 1, 1], [0], [0]>} : vector<4x8x8xf32>, vector<4x8x8xf32>, vector<4x8x8xf32> -> vector<4x8x8xf32>
      "tpu.trace_stop"() : () -> ()
      %cst_73 = arith.constant 0.353553385 : f32
      %120 = vector.broadcast %cst_73 : f32 to vector<4x8x8xf32>
      %121 = arith.mulf %119, %120 : vector<4x8x8xf32>
      %122 = tpu.iota {dimensions = array<i32: 2>} : vector<4x8x8xi32>
      %123 = vector.broadcast %114 : i32 to vector<4x8x8xi32>
      %124 = arith.addi %123, %122 : vector<4x8x8xi32>
      %125 = arith.cmpi sle, %124, %15 : vector<4x8x8xi32>
      %cst_74 = arith.constant -1.000000e+30 : f32
      %126 = vector.broadcast %cst_74 : f32 to vector<4x8x8xf32>
      %127 = arith.select %125, %121, %126 : vector<4x8x8xi1>, vector<4x8x8xf32>
      %c0_75 = arith.constant 0 : index
      %c0_76 = arith.constant 0 : index
      %c0_77 = arith.constant 0 : index
      %128 = vector.load %arg20[%c0_75, %c0_76, %c0_77] : memref<4x8x1xf32, #tpu.memory_space<vmem>>, vector<4x8x1xf32>
      %cst_78 = arith.constant dense<0xFF800000> : vector<4x8xf32>
      %129 = vector.multi_reduction <maximumf>, %127, %cst_78 [2] : vector<4x8x8xf32> to vector<4x8xf32>
      %130 = vector.shape_cast %129 : vector<4x8xf32> to vector<4x8x1xf32>
      %131 = arith.maximumf %128, %130 : vector<4x8x1xf32>
      %c0_79 = arith.constant 0 : index
      %c0_80 = arith.constant 0 : index
      %c0_81 = arith.constant 0 : index
      %132 = vector.load %arg20[%c0_79, %c0_80, %c0_81] : memref<4x8x1xf32, #tpu.memory_space<vmem>>, vector<4x8x1xf32>
      %133 = arith.subf %132, %131 : vector<4x8x1xf32>
      %134 = math.exp %133 : vector<4x8x1xf32>
      %135 = vector.broadcast %131 : vector<4x8x1xf32> to vector<4x8x8xf32>
      %136 = arith.subf %127, %135 : vector<4x8x8xf32>
      %137 = math.exp %136 : vector<4x8x8xf32>
      %c0_82 = arith.constant 0 : index
      %c0_83 = arith.constant 0 : index
      %c0_84 = arith.constant 0 : index
      %138 = vector.load %arg21[%c0_82, %c0_83, %c0_84] : memref<4x8x1xf32, #tpu.memory_space<vmem>>, vector<4x8x1xf32>
      %139 = arith.mulf %134, %138 : vector<4x8x1xf32>
      %cst_85 = arith.constant dense<0.000000e+00> : vector<4x8xf32>
      %140 = vector.multi_reduction <add>, %137, %cst_85 [2] : vector<4x8x8xf32> to vector<4x8xf32>
      %141 = vector.shape_cast %140 : vector<4x8xf32> to vector<4x8x1xf32>
      %142 = arith.addf %139, %141 : vector<4x8x1xf32>
      %c0_86 = arith.constant 0 : index
      %c0_87 = arith.constant 0 : index
      %c0_88 = arith.constant 0 : index
      %143 = vector.load %arg21[%c0_86, %c0_87, %c0_88] : memref<4x8x1xf32, #tpu.memory_space<vmem>>, vector<4x8x1xf32>
      tpu.vector_store %arg21[%c0_86, %c0_87, %c0_88], %142 {strides = array<i32>} : memref<4x8x1xf32, #tpu.memory_space<vmem>>, vector<4x8x1xf32>,
      %c0_89 = arith.constant 0 : index
      %c0_90 = arith.constant 0 : index
      %c0_91 = arith.constant 0 : index
      %144 = vector.load %arg22[%c0_89, %c0_90, %c0_91] : memref<4x8x8xf32, #tpu.memory_space<vmem>>, vector<4x8x8xf32>
      %145 = vector.broadcast %134 : vector<4x8x1xf32> to vector<4x8x8xf32>
      %146 = arith.mulf %145, %144 : vector<4x8x8xf32>
      "tpu.trace_start"() <{level = 10 : i32, message = "hqk,hkd->hqd"}> : () -> ()
      %cst_92 = arith.constant dense<0.000000e+00> : vector<4x8x8xf32>
      %147 = tpu.matmul %137, %118, %cst_92 {dimension_numbers = #tpu.dot_dimension_numbers<[2], [1], [1], [2], [0, 0, 0, 1, 1, 2], [0], [0]>} : vector<4x8x8xf32>, vector<4x8x8xf32>, vector<4x8x8xf32> -> vector<4x8x8xf32>
      "tpu.trace_stop"() : () -> ()
      %148 = arith.addf %146, %147 : vector<4x8x8xf32>
      %c0_93 = arith.constant 0 : index
      %c0_94 = arith.constant 0 : index
      %c0_95 = arith.constant 0 : index
      %149 = vector.load %arg22[%c0_93, %c0_94, %c0_95] : memref<4x8x8xf32, #tpu.memory_space<vmem>>, vector<4x8x8xf32>
      tpu.vector_store %arg22[%c0_93, %c0_94, %c0_95], %148 {strides = array<i32>} : memref<4x8x8xf32, #tpu.memory_space<vmem>>, vector<4x8x8xf32>,
      %c0_96 = arith.constant 0 : index
      %c0_97 = arith.constant 0 : index
      %c0_98 = arith.constant 0 : index
      %150 = vector.load %arg20[%c0_96, %c0_97, %c0_98] : memref<4x8x1xf32, #tpu.memory_space<vmem>>, vector<4x8x1xf32>
      tpu.vector_store %arg20[%c0_96, %c0_97, %c0_98], %131 {strides = array<i32>} : memref<4x8x1xf32, #tpu.memory_space<vmem>>, vector<4x8x1xf32>,
    }
    %c0_21 = arith.constant 0 : index
    %c0_22 = arith.constant 0 : index
    %c0_23 = arith.constant 0 : index
    %23 = vector.load %arg22[%c0_21, %c0_22, %c0_23] : memref<4x8x8xf32, #tpu.memory_space<vmem>>, vector<4x8x8xf32>
    %c0_24 = arith.constant 0 : index
    %c0_25 = arith.constant 0 : index
    %c0_26 = arith.constant 0 : index
    %24 = vector.load %arg21[%c0_24, %c0_25, %c0_26] : memref<4x8x1xf32, #tpu.memory_space<vmem>>, vector<4x8x1xf32>
    %25 = tpu.reciprocal %24 {approx = true} : vector<4x8x1xf32> -> vector<4x8x1xf32>
    %26 = vector.broadcast %25 : vector<4x8x1xf32> to vector<4x8x8xf32>
    %27 = arith.mulf %23, %26 : vector<4x8x8xf32>
    %28 = vector.extract_strided_slice %27 {offsets = [0, 0, 0], sizes = [1, 8, 8], strides = [1, 1, 1]} : vector<4x8x8xf32> to vector<1x8x8xf32>
    %29 = vector.shape_cast %28 : vector<1x8x8xf32> to vector<8x8xf32>
    %c0_27 = arith.constant 0 : index
    %c0_28 = arith.constant 0 : index
    %30 = vector.load %arg19[%c0_27, %c0_28] : memref<8x32xf32, #tpu.memory_space<vmem>>, vector<8x8xf32>
    tpu.vector_store %arg19[%c0_27, %c0_28], %29 {strides = array<i32>} : memref<8x32xf32, #tpu.memory_space<vmem>>, vector<8x8xf32>,
    %31 = vector.extract_strided_slice %27 {offsets = [1, 0, 0], sizes = [1, 8, 8], strides = [1, 1, 1]} : vector<4x8x8xf32> to vector<1x8x8xf32>
    %32 = vector.shape_cast %31 : vector<1x8x8xf32> to vector<8x8xf32>
    %c0_29 = arith.constant 0 : index
    %c8 = arith.constant 8 : index
    %33 = vector.load %arg19[%c0_29, %c8] : memref<8x32xf32, #tpu.memory_space<vmem>>, vector<8x8xf32>
    tpu.vector_store %arg19[%c0_29, %c8], %32 {strides = array<i32>} : memref<8x32xf32, #tpu.memory_space<vmem>>, vector<8x8xf32>,
    %34 = vector.extract_strided_slice %27 {offsets = [2, 0, 0], sizes = [1, 8, 8], strides = [1, 1, 1]} : vector<4x8x8xf32> to vector<1x8x8xf32>
    %35 = vector.shape_cast %34 : vector<1x8x8xf32> to vector<8x8xf32>
    %c0_30 = arith.constant 0 : index
    %c16 = arith.constant 16 : index
    %36 = vector.load %arg19[%c0_30, %c16] : memref<8x32xf32, #tpu.memory_space<vmem>>, vector<8x8xf32>
    tpu.vector_store %arg19[%c0_30, %c16], %35 {strides = array<i32>} : memref<8x32xf32, #tpu.memory_space<vmem>>, vector<8x8xf32>,
    %37 = vector.extract_strided_slice %27 {offsets = [3, 0, 0], sizes = [1, 8, 8], strides = [1, 1, 1]} : vector<4x8x8xf32> to vector<1x8x8xf32>
    %38 = vector.shape_cast %37 : vector<1x8x8xf32> to vector<8x8xf32>
    %c0_31 = arith.constant 0 : index
    %c24 = arith.constant 24 : index
    %39 = vector.load %arg19[%c0_31, %c24] : memref<8x32xf32, #tpu.memory_space<vmem>>, vector<8x8xf32>
    tpu.vector_store %arg19[%c0_31, %c24], %38 {strides = array<i32>} : memref<8x32xf32, #tpu.memory_space<vmem>>, vector<8x8xf32>,
    %c0_32 = arith.constant 0 : index
    %c0_33 = arith.constant 0 : index
    %40 = vector.load %arg19[%c0_32, %c0_33] : memref<8x32xf32, #tpu.memory_space<vmem>>, vector<8x32xf32>
    %c0_34 = arith.constant 0 : index
    %c0_35 = arith.constant 0 : index
    %41 = vector.load %arg7[%c0_34, %c0_35] : memref<32x32xf32, #tpu.memory_space<vmem>>, vector<32x32xf32>
    %cst_36 = arith.constant dense<0.000000e+00> : vector<8x32xf32>
    %42 = tpu.matmul %40, %41, %cst_36 {dimension_numbers = #tpu.dot_dimension_numbers<[1], [0], [0], [1], [0, 0, 1, 1], [], []>} : vector<8x32xf32>, vector<32x32xf32>, vector<8x32xf32> -> vector<8x32xf32>
    %c0_37 = arith.constant 0 : index
    %c0_38 = arith.constant 0 : index
    %43 = vector.load %arg8[%c0_37, %c0_38] : memref<1x32xf32, #tpu.memory_space<vmem>>, vector<1x32xf32>
    %44 = vector.shape_cast %43 : vector<1x32xf32> to vector<32xf32>
    %45 = vector.shape_cast %44 : vector<32xf32> to vector<1x32xf32>
    %46 = vector.broadcast %45 : vector<1x32xf32> to vector<8x32xf32>
    %47 = arith.addf %42, %46 : vector<8x32xf32>
    %c0_39 = arith.constant 0 : index
    %48 = arith.index_cast %4 : i32 to index
    %c0_40 = arith.constant 0 : index
    %49 = vector.load %arg2[%c0_39, %48, %c0_40] : memref<1x16x32xf32, #tpu.memory_space<vmem>>, vector<1x8x32xf32>
    %50 = vector.shape_cast %49 : vector<1x8x32xf32> to vector<8x32xf32>
    %51 = arith.addf %50, %47 : vector<8x32xf32>
    %c0_41 = arith.constant 0 : index
    %c0_42 = arith.constant 0 : index
    %52 = vector.load %arg9[%c0_41, %c0_42] : memref<1x32xf32, #tpu.memory_space<vmem>>, vector<1x32xf32>
    %53 = vector.shape_cast %52 : vector<1x32xf32> to vector<32xf32>
    %c0_43 = arith.constant 0 : index
    %c0_44 = arith.constant 0 : index
    %54 = vector.load %arg10[%c0_43, %c0_44] : memref<1x32xf32, #tpu.memory_space<vmem>>, vector<1x32xf32>
    %55 = vector.shape_cast %54 : vector<1x32xf32> to vector<32xf32>
    %cst_45 = arith.constant dense<0.000000e+00> : vector<8xf32>
    %56 = vector.multi_reduction <add>, %51, %cst_45 [1] : vector<8x32xf32> to vector<8xf32>
    %57 = vector.shape_cast %56 : vector<8xf32> to vector<8x1xf32>
    %cst_46 = arith.constant 3.200000e+01 : f32
    %58 = vector.broadcast %cst_46 : f32 to vector<8x1xf32>
    %59 = arith.divf %57, %58 : vector<8x1xf32>
    %60 = vector.broadcast %59 : vector<8x1xf32> to vector<8x32xf32>
    %61 = arith.subf %51, %60 : vector<8x32xf32>
    %62 = arith.mulf %61, %61 : vector<8x32xf32>
    %cst_47 = arith.constant dense<0.000000e+00> : vector<8xf32>
    %63 = vector.multi_reduction <add>, %62, %cst_47 [1] : vector<8x32xf32> to vector<8xf32>
    %64 = vector.shape_cast %63 : vector<8xf32> to vector<8x1xf32>
    %cst_48 = arith.constant 3.200000e+01 : f32
    %65 = vector.broadcast %cst_48 : f32 to vector<8x1xf32>
    %66 = arith.divf %64, %65 : vector<8x1xf32>
    %67 = vector.broadcast %59 : vector<8x1xf32> to vector<8x32xf32>
    %68 = arith.subf %51, %67 : vector<8x32xf32>
    %cst_49 = arith.constant 9.99999974E-6 : f32
    %69 = vector.broadcast %cst_49 : f32 to vector<8x1xf32>
    %70 = arith.addf %66, %69 : vector<8x1xf32>
    %71 = math.rsqrt %70 : vector<8x1xf32>
    %72 = vector.broadcast %71 : vector<8x1xf32> to vector<8x32xf32>
    %73 = arith.mulf %68, %72 : vector<8x32xf32>
    %74 = vector.shape_cast %53 : vector<32xf32> to vector<1x32xf32>
    %75 = vector.broadcast %74 : vector<1x32xf32> to vector<8x32xf32>
    %76 = arith.mulf %73, %75 : vector<8x32xf32>
    %77 = vector.shape_cast %55 : vector<32xf32> to vector<1x32xf32>
    %78 = vector.broadcast %77 : vector<1x32xf32> to vector<8x32xf32>
    %79 = arith.addf %76, %78 : vector<8x32xf32>
    %c0_50 = arith.constant 0 : index
    %c0_51 = arith.constant 0 : index
    %80 = vector.load %arg11[%c0_50, %c0_51] : memref<32x128xf32, #tpu.memory_space<vmem>>, vector<32x128xf32>
    %cst_52 = arith.constant dense<0.000000e+00> : vector<8x128xf32>
    %81 = tpu.matmul %79, %80, %cst_52 {dimension_numbers = #tpu.dot_dimension_numbers<[1], [0], [0], [1], [0, 0, 1, 1], [], []>} : vector<8x32xf32>, vector<32x128xf32>, vector<8x128xf32> -> vector<8x128xf32>
    %c0_53 = arith.constant 0 : index
    %c0_54 = arith.constant 0 : index
    %82 = vector.load %arg12[%c0_53, %c0_54] : memref<1x128xf32, #tpu.memory_space<vmem>>, vector<1x128xf32>
    %83 = vector.shape_cast %82 : vector<1x128xf32> to vector<128xf32>
    %84 = vector.shape_cast %83 : vector<128xf32> to vector<1x128xf32>
    %85 = vector.broadcast %84 : vector<1x128xf32> to vector<8x128xf32>
    %86 = arith.addf %81, %85 : vector<8x128xf32>
    %cst_55 = arith.constant 5.000000e-01 : f32
    %87 = vector.broadcast %cst_55 : f32 to vector<8x128xf32>
    %88 = arith.mulf %87, %86 : vector<8x128xf32>
    %cst_56 = arith.constant 4.471500e-02 : f32
    %89 = vector.broadcast %cst_56 : f32 to vector<8x128xf32>
    %90 = arith.mulf %89, %86 : vector<8x128xf32>
    %91 = arith.mulf %90, %86 : vector<8x128xf32>
    %92 = arith.mulf %91, %86 : vector<8x128xf32>
    %93 = arith.addf %86, %92 : vector<8x128xf32>
    %cst_57 = arith.constant 0.797884583 : f32
    %94 = vector.broadcast %cst_57 : f32 to vector<8x128xf32>
    %95 = arith.mulf %94, %93 : vector<8x128xf32>
    %96 = math.tanh %95 : vector<8x128xf32>
    %cst_58 = arith.constant 1.000000e+00 : f32
    %97 = vector.broadcast %cst_58 : f32 to vector<8x128xf32>
    %98 = arith.addf %97, %96 : vector<8x128xf32>
    %99 = arith.mulf %88, %98 : vector<8x128xf32>
    %c0_59 = arith.constant 0 : index
    %c0_60 = arith.constant 0 : index
    %100 = vector.load %arg13[%c0_59, %c0_60] : memref<128x32xf32, #tpu.memory_space<vmem>>, vector<128x32xf32>
    %cst_61 = arith.constant dense<0.000000e+00> : vector<8x32xf32>
    %101 = tpu.matmul %99, %100, %cst_61 {dimension_numbers = #tpu.dot_dimension_numbers<[1], [0], [0], [1], [0, 0, 1, 1], [], []>} : vector<8x128xf32>, vector<128x32xf32>, vector<8x32xf32> -> vector<8x32xf32>
    %c0_62 = arith.constant 0 : index
    %c0_63 = arith.constant 0 : index
    %102 = vector.load %arg14[%c0_62, %c0_63] : memref<1x32xf32, #tpu.memory_space<vmem>>, vector<1x32xf32>
    %103 = vector.shape_cast %102 : vector<1x32xf32> to vector<32xf32>
    %104 = vector.shape_cast %103 : vector<32xf32> to vector<1x32xf32>
    %105 = vector.broadcast %104 : vector<1x32xf32> to vector<8x32xf32>
    %106 = arith.addf %101, %105 : vector<8x32xf32>
    %107 = arith.addf %51, %106 : vector<8x32xf32>
    %c0_64 = arith.constant 0 : index
    %c0_65 = arith.constant 0 : index
    %c0_66 = arith.constant 0 : index
    %108 = vector.load %arg15[%c0_64, %c0_65, %c0_66] : memref<1x8x32xf32, #tpu.memory_space<vmem>>, vector<1x8x32xf32>
    %109 = vector.shape_cast %108 : vector<1x8x32xf32> to vector<8x32xf32>
    %110 = vector.shape_cast %107 : vector<8x32xf32> to vector<1x8x32xf32>
    tpu.vector_store %arg15[%c0_64, %c0_65, %c0_66], %110 {strides = array<i32>} : memref<1x8x32xf32, #tpu.memory_space<vmem>>, vector<1x8x32xf32>,
    return
  }
  func.func @transform_0(%arg0: i32, %arg1: i32) -> (i32, i32, i32) {
    %c0_i32 = arith.constant 0 : i32
    %c0_i32_0 = arith.constant 0 : i32
    %c0_i32_1 = arith.constant 0 : i32
    return %arg0, %c0_i32, %c0_i32_0 : i32, i32, i32
  }
  func.func @transform_1(%arg0: i32, %arg1: i32) -> (i32, i32) {
    %c0_i32 = arith.constant 0 : i32
    %c0_i32_0 = arith.constant 0 : i32
    %c0_i32_1 = arith.constant 0 : i32
    return %c0_i32, %c0_i32_0 : i32, i32
  }
  func.func @transform_2(%arg0: i32, %arg1: i32) -> (i32, i32) {
    %c0_i32 = arith.constant 0 : i32
    %c0_i32_0 = arith.constant 0 : i32
    %c0_i32_1 = arith.constant 0 : i32
    return %c0_i32, %c0_i32_0 : i32, i32
  }
  func.func @transform_3(%arg0: i32, %arg1: i32) -> (i32, i32) {
    %c0_i32 = arith.constant 0 : i32
    %c0_i32_0 = arith.constant 0 : i32
    %c0_i32_1 = arith.constant 0 : i32
    return %c0_i32, %c0_i32_0 : i32, i32
  }
  func.func @transform_4(%arg0: i32, %arg1: i32) -> (i32, i32) {
    %c0_i32 = arith.constant 0 : i32
    %c0_i32_0 = arith.constant 0 : i32
    %c0_i32_1 = arith.constant 0 : i32
    return %c0_i32, %c0_i32_0 : i32, i32
  }
  func.func @transform_5(%arg0: i32, %arg1: i32) -> (i32, i32) {
    %c0_i32 = arith.constant 0 : i32
    %c0_i32_0 = arith.constant 0 : i32
    %c0_i32_1 = arith.constant 0 : i32
    return %c0_i32, %c0_i32_0 : i32, i32
  }
  func.func @transform_6(%arg0: i32, %arg1: i32) -> (i32, i32) {
    %c0_i32 = arith.constant 0 : i32
    %c0_i32_0 = arith.constant 0 : i32
    %c0_i32_1 = arith.constant 0 : i32
    return %c0_i32, %c0_i32_0 : i32, i32
  }
  func.func @transform_7(%arg0: i32, %arg1: i32) -> (i32, i32) {
    %c0_i32 = arith.constant 0 : i32
    %c0_i32_0 = arith.constant 0 : i32
    %c0_i32_1 = arith.constant 0 : i32
    return %c0_i32, %c0_i32_0 : i32, i32
  }
  func.func @transform_8(%arg0: i32, %arg1: i32) -> (i32, i32) {
    %c0_i32 = arith.constant 0 : i32
    %c0_i32_0 = arith.constant 0 : i32
    %c0_i32_1 = arith.constant 0 : i32
    return %c0_i32, %c0_i32_0 : i32, i32
  }
  func.func @transform_9(%arg0: i32, %arg1: i32) -> (i32, i32) {
    %c0_i32 = arith.constant 0 : i32
    %c0_i32_0 = arith.constant 0 : i32
    %c0_i32_1 = arith.constant 0 : i32
    return %c0_i32, %c0_i32_0 : i32, i32
  }
  func.func @transform_10(%arg0: i32, %arg1: i32) -> (i32, i32) {
    %c0_i32 = arith.constant 0 : i32
    %c0_i32_0 = arith.constant 0 : i32
    %c0_i32_1 = arith.constant 0 : i32
    return %c0_i32, %c0_i32_0 : i32, i32
  }
  func.func @transform_11(%arg0: i32, %arg1: i32) -> (i32, i32) {
    %c0_i32 = arith.constant 0 : i32
    %c0_i32_0 = arith.constant 0 : i32
    %c0_i32_1 = arith.constant 0 : i32
    return %c0_i32, %c0_i32_0 : i32, i32
  }
  func.func @transform_12(%arg0: i32, %arg1: i32) -> (i32, i32) {
    %c0_i32 = arith.constant 0 : i32
    %c0_i32_0 = arith.constant 0 : i32
    %c0_i32_1 = arith.constant 0 : i32
    return %c0_i32, %c0_i32_0 : i32, i32
  }
  func.func @transform_13(%arg0: i32, %arg1: i32) -> (i32, i32, i32) {
    %c0_i32 = arith.constant 0 : i32
    %c0_i32_0 = arith.constant 0 : i32
    return %arg0, %arg1, %c0_i32 : i32, i32, i32
  }
}

</mosaic_0001>

<bundles_post_ra>
// kernel: tpu_custom_call.1
= control target key start
LH: loop header
LB: loop body
LE: loop exit
PB: predicated region body
PF: predicated region fallthrough
CT: control target
= control target key end

     0   :  { %s4169_s0 = inlined_call_operand.hbm [shape: f32[2,16,32], index: 0, kind: input, shape index: {}]   ;;  %s4170_s1 = inlined_call_operand.hbm [shape: f32[1,32], index: 1, kind: input, shape index: {}]   ;;  %s4171_s2 = inlined_call_operand.hbm [shape: f32[1,32], index: 2, kind: input, shape index: {}]   ;;  %s4172_s3 = inlined_call_operand.hbm [shape: f32[32,96], index: 3, kind: input, shape index: {}]   ;;  %s4173_s4 = inlined_call_operand.hbm [shape: f32[1,96], index: 4, kind: input, shape index: {}]   ;;  %s4174_s5 = inlined_call_operand.hbm [shape: f32[32,32], index: 5, kind: input, shape index: {}]   ;;  %s4175_s6 = inlined_call_operand.hbm [shape: f32[1,32], index: 6, kind: input, shape index: {}]   ;;  %s4176_s7 = inlined_call_operand.hbm [shape: f32[1,32], index: 7, kind: input, shape index: {}]   ;;  %s4177_s8 = inlined_call_operand.hbm [shape: f32[1,32], index: 8, kind: input, shape index: {}]   ;;  %s4178_s9 = inlined_call_operand.hbm [shape: f32[32,128], index: 9, kind: input, shape index: {}]   ;;  %s4179_s10 = inlined_call_operand.hbm [shape: f32[1,128], index: 10, kind: input, shape index: {}]   ;;  %s4180_s11 = inlined_call_operand.hbm [shape: f32[128,32], index: 11, kind: input, shape index: {}]   ;;  %s4181_s12 = inlined_call_operand.hbm [shape: f32[1,32], index: 12, kind: input, shape index: {}]   ;;  %s4182_s13 = inlined_call_operand.hbm [shape: f32[2,16,32], index: 13, kind: output, shape index: {}]  }
   0x1   :  { %4201 = sst [smem:[#allocation48_spill]] %s4169_s0 }
   0x2   :  { %4202 = sst [smem:[#allocation49_spill]] %s4170_s1 }
   0x3   :  { %4203 = sst [smem:[#allocation50_spill]] %s4171_s2 }
   0x4   :  { %4204 = sst [smem:[#allocation51_spill]] %s4172_s3 }
   0x5   :  { %4205 = sst [smem:[#allocation52_spill]] %s4173_s4 }
   0x6   :  { %4206 = sst [smem:[#allocation53_spill]] %s4174_s5 }
   0x7   :  { %4207 = sst [smem:[#allocation54_spill]] %s4175_s6 }
   0x8   :  { %4208 = sst [smem:[#allocation55_spill]] %s4176_s7 }
   0x9   :  { %4209 = sst [smem:[#allocation56_spill]] %s4182_s13 }
   0xa   :  { %18 = vsyncpa [#allocation10], 0 }
   0xb   :  { %20 = vsyncpa [#allocation10 + $0x1], 0 }
   0xc   :  { %21 = vsyncpa [#allocation13], 0 }
   0xd   :  { %22 = vsyncpa [#allocation16], 0 }
   0xe   :  { %23 = vsyncpa [#allocation19], 0 }
   0xf   :  { %24 = vsyncpa [#allocation22], 0 }
  0x10   :  { %25 = vsyncpa [#allocation25], 0 }
  0x11   :  { %26 = vsyncpa [#allocation28], 0 }
  0x12   :  { %27 = vsyncpa [#allocation11], 0 }
  0x13   :  { %29 = vsyncpa [#allocation11 + $0x1], 0  ;;  %s3438_s25 = smov 0   ;;  %s3440_s26 = smov 0  }
  0x14   :  { %s3442_s27 = smov 0   ;;  %s3444_s28 = smov 0  }
  0x15   :  { %s3446_s29 = smov 0   ;;  %s3448_s30 = smov 0  }
  0x16   :  { %s3450_s14 = smov 0   ;;  %s3452_s15 = smov 0  }
  0x17   :  { %s3454_s16 = smov 0   ;;  %s3456_s17 = smov 0  }
  0x18   :  { %s3458_s18 = smov 0  }
  0x19 LB: > { %4210 = sst [smem:[#allocation39_spill]] %s3284_s25  ;;  %s4184_s19 = sadd.s32 4294967295, %s3324_s18   ;;  %s3324_s18 = sphi %s3458_s18, %s35_s18   ;;  %s3320_s17 = sphi %s3456_s17, %s4276_s17   ;;  %s3316_s16 = sphi %s3454_s16, %s4275_s16   ;;  %s3312_s15 = sphi %s3452_s15, %s4274_s15   ;;  %s3308_s14 = sphi %s3450_s14, %s4273_s14   ;;  %s3304_s30 = sphi %s3448_s30, %s4272_s30   ;;  %s3300_s29 = sphi %s3446_s29, %s4271_s29   ;;  %s3296_s28 = sphi %s3444_s28, %s4270_s28   ;;  %s3292_s27 = sphi %s3442_s27, %s4269_s27   ;;  %s3288_s26 = sphi %s3440_s26, %s4265_s26   ;;  %s3284_s25 = sphi %s3438_s25, %s4264_s25  }
  0x1a   : > { %4211 = sst [smem:[#allocation40_spill]] %s3288_s26  ;;  %p2250_p0 = scmp.ge.s32.totalorder %s3324_s18, 1 }
  0x1b   : > { %4212 = sst [smem:[#allocation41_spill]] %s3292_s27  ;;  %p3497_p1 = scmp.eq.s32.totalorder %s4184_s19, 0 }
  0x1c   : > { %4213 = sst [smem:[#allocation42_spill]] %s3296_s28  ;;  %p358_p2 = scmp.lt.s32.totalorder %s3324_s18, 5 }
  0x1d   : > { %4214 = sst [smem:[#allocation43_spill]] %s3300_s29  ;;  %s3330_s22 = smov [#allocation12]  }
  0x1e   : > { %4215 = sst [smem:[#allocation44_spill]] %s3308_s14  ;;  %p3502_p3 = pnand %p2250_p0, %p358_p2 }
  0x1f   : > { %4216 = sst [smem:[#allocation45_spill]] %s3312_s15  ;;  %s371_s23 = sshll.u32 %s3330_s22, 4  ;;  %s372_s23 = int_to_ptr.vmem [resolvable:$true] %s371_s23 }
  0x20   : > { %s4217_s20 = scalar_select %p3497_p1, 1, 0 }
  0x21   : > { %s4219_s21 = scalar_select %p3502_p3, 1, 0 }
  0x22   : > { %4218 = sst [smem:[#allocation46_spill]] %s4217_s20  ;;  %p2569_p4 = pneg %p3502_p3 }
  0x23   : > { %4220 = sst [smem:[#allocation47_spill]] %s4219_s21  ;;  %s3331_s24 = smov [#allocation15]  }
  0x24   : > { %s392_s13 = sshll.u32 %s3331_s24, 4  ;;  %p3510_p5 = pnand %p2569_p4, %p3497_p1  ;;  %s3514_s13 = int_to_ptr.vmem [resolvable:$true] %s392_s13 }
  0x25   : > { %s3332_s15 = smov [#allocation18]   ;;  %s4222_s1 = sld [smem:[#allocation49_spill]] }
  0x26   : > { %s3516_s14 = sshll.u32 %s3332_s15, 4  ;;  %p3526_p7 = pneg %p3510_p5  ;;  %s417_s14 = int_to_ptr.vmem [resolvable:$true] %s3516_s14 }
  0x2b   : > { %s2808_s22 = scalar_lea.hbm %s4222_s1, 16 }
  0x2c   : > { %p2809_p6 = scmp.ne.s32.totalorder %s4222_s1, %s2808_s22  ;;  %p2815_p10 = scmp.lt.u32.totalorder %s2808_s22, %s4222_s1 }
  0x2e   : > { %p2811_p8 = pnand %p3526_p7, %p2809_p6 }
  0x30   : > { %p2812_p9 = pneg %p2811_p8 }
  0x32   : > { %p2817_p11 = pnand %p2815_p10, %p2812_p9 }
  0x34   : > { %2820 = shalt.err (!%p2817_p11)
}
  0x35   : > { %s2821_s0 = scalar_lea.vmem %s372_s23, 16  ;;  %s2828_s25 = scalar_lea.vmem %s372_s23, 32 }
  0x36   : > { %p2822_p12 = scmp.ne.s32.totalorder %s372_s23, %s2821_s0  ;;  %p2829_p2 = scmp.lt.s32.totalorder %s372_s23, %s372_s23 }
  0x37   : > { %p2830_p4 = scmp.lt.s32.totalorder %s2828_s25, %s2821_s0 }
  0x38   : > { %p2824_p13 = pnand %p2822_p12, %p3526_p7 }
  0x39   : > { %p2831_p3 = por %p2830_p4, %p2829_p2 }
  0x3a   : > { %p2825_p0 = pneg %p2824_p13 }
  0x3c   : > { %p2832_p1 = pnand %p2831_p3, %p2825_p0 }
  0x3e   : > { %2835 = shalt.err (!%p2832_p1)
}
  0x3f   : > { %2572 = dma.hbm_to_vmem [thread:$0]  (!%p3510_p5), %s4222_s1, 16, %s372_s23, [#allocation13]  }
  0x40   : > { %s4224_s3 = sld [smem:[#allocation51_spill]] }
  0x46   : > { %s2836_s15 = scalar_lea.hbm %s4224_s3, 512 }
  0x47   : > { %p2837_p6 = scmp.ne.s32.totalorder %s4224_s3, %s2836_s15  ;;  %p2843_p1 = scmp.lt.u32.totalorder %s2836_s15, %s4224_s3 }
  0x49   : > { %p2839_p8 = pnand %p2837_p6, %p3526_p7 }
  0x4b   : > { %p2840_p9 = pneg %p2839_p8 }
  0x4d   : > { %p2845_p3 = pnand %p2843_p1, %p2840_p9 }
  0x4f   : > { %2848 = shalt.err (!%p2845_p3)
}
  0x50   : > { %s2849_s23 = scalar_lea.vmem %s3514_s13, 512  ;;  %p2857_p13 = scmp.lt.s32.totalorder %s3514_s13, %s3514_s13 }
  0x51   : > { %p2850_p10 = scmp.ne.s32.totalorder %s3514_s13, %s2849_s23  ;;  %p2858_p0 = scmp.lt.s32.totalorder %s2849_s23, %s2849_s23 }
  0x53   : > { %p2852_p11 = pnand %p2850_p10, %p3526_p7  ;;  %p2859_p2 = por %p2858_p0, %p2857_p13 }
  0x55   : > { %p2853_p12 = pneg %p2852_p11 }
  0x57   : > { %p2860_p4 = pnand %p2859_p2, %p2853_p12 }
  0x59   : > { %2863 = shalt.err (!%p2860_p4)
}
  0x5a   : > { %s4197_s28 = smov 128   ;;  %s4198_s20 = smov 8  }
  0x5b   : > { %2578 = dma.hbm_to_vmem [thread:$0]  (!%p3510_p5), %s4224_s3, 512, %s3514_s13, [#allocation16], %s4197_s28, %s4197_s28, %s4198_s20  }
  0x5c   : > { %s4225_s5 = sld [smem:[#allocation53_spill]] }
  0x62   : > { %s2864_s15 = scalar_lea.hbm %s4225_s5, 512 }
  0x63   : > { %p2865_p6 = scmp.ne.s32.totalorder %s4225_s5, %s2864_s15  ;;  %p2871_p1 = scmp.lt.u32.totalorder %s2864_s15, %s4225_s5 }
  0x65   : > { %p2867_p8 = pnand %p2865_p6, %p3526_p7 }
  0x67   : > { %p2868_p9 = pneg %p2867_p8 }
  0x69   : > { %p2873_p3 = pnand %p2871_p1, %p2868_p9 }
  0x6b   : > { %2876 = shalt.err (!%p2873_p3)
}
  0x6c   : > { %s2877_s26 = scalar_lea.vmem %s417_s14, 512  ;;  %p2885_p13 = scmp.lt.s32.totalorder %s417_s14, %s417_s14 }
  0x6d   : > { %p2878_p10 = scmp.ne.s32.totalorder %s417_s14, %s2877_s26  ;;  %p2886_p0 = scmp.lt.s32.totalorder %s2877_s26, %s2877_s26 }
  0x6f   : > { %p2880_p11 = pnand %p2878_p10, %p3526_p7  ;;  %p2887_p2 = por %p2886_p0, %p2885_p13 }
  0x71   : > { %p2881_p12 = pneg %p2880_p11 }
  0x73   : > { %p2888_p4 = pnand %p2887_p2, %p2881_p12 }
  0x75   : > { %2891 = shalt.err (!%p2888_p4)
}
  0x76   : > { %2584 = dma.hbm_to_vmem [thread:$0]  (!%p3510_p5), %s4225_s5, 512, %s417_s14, [#allocation19], %s4197_s28, %s4197_s28, %s4198_s20  }
  0x77   : > { %s3335_s21 = smov [#allocation21]   ;;  %s3336_s22 = smov [#allocation24]  }
  0x78   : > { %s441_s27 = sshll.u32 %s3335_s21, 4  ;;  %s462_s15 = sshll.u32 %s3336_s22, 4  ;;  %s442_s27 = int_to_ptr.vmem [resolvable:$true] %s441_s27  ;;  %s463_s15 = int_to_ptr.vmem [resolvable:$true] %s462_s15 }
  0x79   : > { %s4226_s7 = sld [smem:[#allocation55_spill]] }
  0x7f   : > { %s2892_s23 = scalar_lea.hbm %s4226_s7, 16 }
  0x80   : > { %p2893_p6 = scmp.ne.s32.totalorder %s4226_s7, %s2892_s23  ;;  %p2899_p1 = scmp.lt.u32.totalorder %s2892_s23, %s4226_s7 }
  0x82   : > { %p2895_p8 = pnand %p2893_p6, %p3526_p7 }
  0x84   : > { %p2896_p9 = pneg %p2895_p8 }
  0x86   : > { %p2901_p3 = pnand %p2899_p1, %p2896_p9 }
  0x88   : > { %2904 = shalt.err (!%p2901_p3)
}
  0x89   : > { %s2905_s14 = scalar_lea.vmem %s442_s27, 16  ;;  %s2912_s13 = scalar_lea.vmem %s442_s27, 32 }
  0x8a   : > { %p2906_p10 = scmp.ne.s32.totalorder %s442_s27, %s2905_s14  ;;  %p2913_p13 = scmp.lt.s32.totalorder %s442_s27, %s442_s27 }
  0x8b   : > { %p2914_p0 = scmp.lt.s32.totalorder %s2912_s13, %s2905_s14 }
  0x8c   : > { %p2908_p11 = pnand %p2906_p10, %p3526_p7 }
  0x8d   : > { %p2915_p2 = por %p2914_p0, %p2913_p13 }
  0x8e   : > { %p2909_p12 = pneg %p2908_p11 }
  0x90   : > { %p2916_p4 = pnand %p2915_p2, %p2909_p12 }
  0x92   : > { %2919 = shalt.err (!%p2916_p4)
}
  0x93   : > { %2590 = dma.hbm_to_vmem [thread:$0]  (!%p3510_p5), %s4226_s7, 16, %s442_s27, [#allocation22]  }
  0x94   : > { %s2920_s0 = scalar_lea.hbm %s4178_s9, 512 }
  0x95   : > { %p2921_p6 = scmp.ne.s32.totalorder %s4178_s9, %s2920_s0  ;;  %p2927_p1 = scmp.lt.u32.totalorder %s2920_s0, %s4178_s9 }
  0x97   : > { %p2923_p8 = pnand %p2921_p6, %p3526_p7 }
  0x99   : > { %p2924_p9 = pneg %p2923_p8 }
  0x9b   : > { %p2929_p3 = pnand %p2927_p1, %p2924_p9 }
  0x9d   : > { %2932 = shalt.err (!%p2929_p3)
}
  0x9e   : > { %s2933_s14 = scalar_lea.vmem %s463_s15, 512  ;;  %p2941_p13 = scmp.lt.s32.totalorder %s463_s15, %s463_s15 }
  0x9f   : > { %p2934_p10 = scmp.ne.s32.totalorder %s463_s15, %s2933_s14  ;;  %p2942_p0 = scmp.lt.s32.totalorder %s2933_s14, %s2933_s14 }
  0xa1   : > { %p2936_p11 = pnand %p2934_p10, %p3526_p7  ;;  %p2943_p2 = por %p2942_p0, %p2941_p13 }
  0xa3   : > { %p2937_p12 = pneg %p2936_p11 }
  0xa5   : > { %p2944_p4 = pnand %p2943_p2, %p2937_p12 }
  0xa7   : > { %2947 = shalt.err (!%p2944_p4)
}
  0xa8   : > { %2596 = dma.hbm_to_vmem [thread:$0]  (!%p3510_p5), %s4178_s9, 512, %s463_s15, [#allocation25], %s4197_s28, %s4197_s28, %s4198_s20  }
  0xa9   : > { %s3337_s3 = smov [#allocation27]   ;;  %s3338_s29 = smov [#allocation14]  }
  0xaa   : > { %s486_s21 = sshll.u32 %s3337_s3, 4  ;;  %s382_s22 = sshll.u32 %s3338_s29, 4  ;;  %s487_s21 = int_to_ptr.vmem [resolvable:$true] %s486_s21  ;;  %s383_s22 = int_to_ptr.vmem [resolvable:$true] %s382_s22 }
  0xab   : > { %s2948_s23 = scalar_lea.hbm %s4180_s11, 2048 }
  0xac   : > { %p2949_p6 = scmp.ne.s32.totalorder %s4180_s11, %s2948_s23  ;;  %p2955_p1 = scmp.lt.u32.totalorder %s2948_s23, %s4180_s11 }
  0xae   : > { %p2951_p8 = pnand %p2949_p6, %p3526_p7 }
  0xb0   : > { %p2952_p9 = pneg %p2951_p8 }
  0xb2   : > { %p2957_p3 = pnand %p2955_p1, %p2952_p9 }
  0xb4   : > { %2960 = shalt.err (!%p2957_p3)
}
  0xb5   : > { %s2961_s15 = scalar_lea.vmem %s487_s21, 2048  ;;  %p2969_p13 = scmp.lt.s32.totalorder %s487_s21, %s487_s21 }
  0xb6   : > { %p2962_p10 = scmp.ne.s32.totalorder %s487_s21, %s2961_s15  ;;  %p2970_p0 = scmp.lt.s32.totalorder %s2961_s15, %s2961_s15 }
  0xb8   : > { %p2964_p11 = pnand %p2962_p10, %p3526_p7  ;;  %p2971_p2 = por %p2970_p0, %p2969_p13 }
  0xba   : > { %p2965_p12 = pneg %p2964_p11 }
  0xbc   : > { %p2972_p4 = pnand %p2971_p2, %p2965_p12 }
  0xbe   : > { %2975 = shalt.err (!%p2972_p4)
}
  0xbf   : > { %2602 = dma.hbm_to_vmem [thread:$0]  (!%p3510_p5), %s4180_s11, 2048, %s487_s21, [#allocation28], %s4197_s28, %s4197_s28, %s4198_s20  }
  0xc0   : > { %s4227_s2 = sld [smem:[#allocation50_spill]] }
  0xc6   : > { %s2976_s25 = scalar_lea.hbm %s4227_s2, 16 }
  0xc7   : > { %p2977_p6 = scmp.ne.s32.totalorder %s4227_s2, %s2976_s25  ;;  %p2983_p1 = scmp.lt.u32.totalorder %s2976_s25, %s4227_s2 }
  0xc9   : > { %p2979_p8 = pnand %p2977_p6, %p3526_p7 }
  0xcb   : > { %p2980_p9 = pneg %p2979_p8 }
  0xcd   : > { %p2985_p3 = pnand %p2983_p1, %p2980_p9 }
  0xcf   : > { %2988 = shalt.err (!%p2985_p3)
}
  0xd0   : > { %s2989_s27 = scalar_lea.vmem %s383_s22, 16  ;;  %s2996_s21 = scalar_lea.vmem %s383_s22, 32 }
  0xd1   : > { %p2990_p10 = scmp.ne.s32.totalorder %s383_s22, %s2989_s27  ;;  %p2997_p13 = scmp.lt.s32.totalorder %s383_s22, %s383_s22 }
  0xd2   : > { %p2998_p0 = scmp.lt.s32.totalorder %s2996_s21, %s2989_s27 }
  0xd3   : > { %p2992_p11 = pnand %p2990_p10, %p3526_p7 }
  0xd4   : > { %p2999_p2 = por %p2998_p0, %p2997_p13 }
  0xd5   : > { %p2993_p12 = pneg %p2992_p11 }
  0xd7   : > { %p3000_p4 = pnand %p2999_p2, %p2993_p12 }
  0xd9   : > { %3003 = shalt.err (!%p3000_p4)
}
  0xda   : > { %2575 = dma.hbm_to_vmem [thread:$0]  (!%p3510_p5), %s4227_s2, 16, %s383_s22, [#allocation13]  }
  0xdb   : > { %s3339_s3 = smov [#allocation17]   ;;  %s3340_s0 = smov [#allocation20]  }
  0xdc   : > { %s406_s29 = sshll.u32 %s3339_s3, 4  ;;  %s430_s25 = sshll.u32 %s3340_s0, 4  ;;  %s407_s29 = int_to_ptr.vmem [resolvable:$true] %s406_s29  ;;  %s431_s25 = int_to_ptr.vmem [resolvable:$true] %s430_s25 }
  0xdd   : > { %s4228_s4 = sld [smem:[#allocation52_spill]] }
  0xe3   : > { %s3004_s1 = scalar_lea.hbm %s4228_s4, 16 }
  0xe4   : > { %p3005_p6 = scmp.ne.s32.totalorder %s4228_s4, %s3004_s1  ;;  %p3011_p1 = scmp.lt.u32.totalorder %s3004_s1, %s4228_s4 }
  0xe6   : > { %p3007_p8 = pnand %p3005_p6, %p3526_p7 }
  0xe8   : > { %p3008_p9 = pneg %p3007_p8 }
  0xea   : > { %p3013_p3 = pnand %p3011_p1, %p3008_p9 }
  0xec   : > { %3016 = shalt.err (!%p3013_p3)
}
  0xed   : > { %s3017_s22 = scalar_lea.vmem %s407_s29, 16  ;;  %s3024_s13 = scalar_lea.vmem %s407_s29, 32 }
  0xee   : > { %p3018_p10 = scmp.ne.s32.totalorder %s407_s29, %s3017_s22  ;;  %p3025_p13 = scmp.lt.s32.totalorder %s407_s29, %s407_s29 }
  0xef   : > { %p3026_p0 = scmp.lt.s32.totalorder %s3024_s13, %s3017_s22 }
  0xf0   : > { %p3020_p11 = pnand %p3018_p10, %p3526_p7 }
  0xf1   : > { %p3027_p2 = por %p3026_p0, %p3025_p13 }
  0xf2   : > { %p3021_p12 = pneg %p3020_p11 }
  0xf4   : > { %p3028_p4 = pnand %p3027_p2, %p3021_p12 }
  0xf6   : > { %3031 = shalt.err (!%p3028_p4)
}
  0xf7   : > { %2581 = dma.hbm_to_vmem [thread:$0]  (!%p3510_p5), %s4228_s4, 16, %s407_s29, [#allocation16]  }
  0xf8   : > { %s4229_s6 = sld [smem:[#allocation54_spill]] }
  0xfe   : > { %s3032_s1 = scalar_lea.hbm %s4229_s6, 16 }
  0xff   : > { %p3033_p6 = scmp.ne.s32.totalorder %s4229_s6, %s3032_s1  ;;  %p3039_p1 = scmp.lt.u32.totalorder %s3032_s1, %s4229_s6 }
 0x101   : > { %p3035_p8 = pnand %p3033_p6, %p3526_p7 }
 0x103   : > { %p3036_p9 = pneg %p3035_p8 }
 0x105   : > { %p3041_p3 = pnand %p3039_p1, %p3036_p9 }
 0x107   : > { %3044 = shalt.err (!%p3041_p3)
}
 0x108   : > { %s3045_s22 = scalar_lea.vmem %s431_s25, 16  ;;  %s3052_s29 = scalar_lea.vmem %s431_s25, 32 }
 0x109   : > { %p3046_p10 = scmp.ne.s32.totalorder %s431_s25, %s3045_s22  ;;  %p3053_p13 = scmp.lt.s32.totalorder %s431_s25, %s431_s25 }
 0x10a   : > { %p3054_p0 = scmp.lt.s32.totalorder %s3052_s29, %s3045_s22 }
 0x10b   : > { %p3048_p11 = pnand %p3046_p10, %p3526_p7 }
 0x10c   : > { %p3055_p2 = por %p3054_p0, %p3053_p13 }
 0x10d   : > { %p3049_p12 = pneg %p3048_p11 }
 0x10f   : > { %p3056_p4 = pnand %p3055_p2, %p3049_p12 }
 0x111   : > { %3059 = shalt.err (!%p3056_p4)
}
 0x112   : > { %2587 = dma.hbm_to_vmem [thread:$0]  (!%p3510_p5), %s4229_s6, 16, %s431_s25, [#allocation19]  }
 0x113   : > { %s3341_s0 = smov [#allocation23]   ;;  %s3342_s26 = smov [#allocation26]  }
 0x114   : > { %s452_s23 = sshll.u32 %s3341_s0, 4  ;;  %s476_s1 = sshll.u32 %s3342_s26, 4  ;;  %s453_s23 = int_to_ptr.vmem [resolvable:$true] %s452_s23  ;;  %s477_s1 = int_to_ptr.vmem [resolvable:$true] %s476_s1 }
 0x115   : > { %s3060_s21 = scalar_lea.hbm %s4177_s8, 16 }
 0x116   : > { %p3061_p6 = scmp.ne.s32.totalorder %s4177_s8, %s3060_s21  ;;  %p3067_p1 = scmp.lt.u32.totalorder %s3060_s21, %s4177_s8 }
 0x118   : > { %p3063_p8 = pnand %p3061_p6, %p3526_p7 }
 0x11a   : > { %p3064_p9 = pneg %p3063_p8 }
 0x11c   : > { %p3069_p3 = pnand %p3067_p1, %p3064_p9 }
 0x11e   : > { %3072 = shalt.err (!%p3069_p3)
}
 0x11f   : > { %s3073_s25 = scalar_lea.vmem %s453_s23, 16  ;;  %s3080_s3 = scalar_lea.vmem %s453_s23, 32 }
 0x120   : > { %p3074_p10 = scmp.ne.s32.totalorder %s453_s23, %s3073_s25  ;;  %p3081_p13 = scmp.lt.s32.totalorder %s453_s23, %s453_s23 }
 0x121   : > { %p3082_p0 = scmp.lt.s32.totalorder %s3080_s3, %s3073_s25 }
 0x122   : > { %p3076_p11 = pnand %p3074_p10, %p3526_p7 }
 0x123   : > { %p3083_p2 = por %p3082_p0, %p3081_p13 }
 0x124   : > { %p3077_p12 = pneg %p3076_p11 }
 0x126   : > { %p3084_p4 = pnand %p3083_p2, %p3077_p12 }
 0x128   : > { %3087 = shalt.err (!%p3084_p4)
}
 0x129   : > { %2593 = dma.hbm_to_vmem [thread:$0]  (!%p3510_p5), %s4177_s8, 16, %s453_s23, [#allocation22]  }
 0x12a   : > { %s3088_s21 = scalar_lea.hbm %s4179_s10, 16 }
 0x12b   : > { %p3089_p6 = scmp.ne.s32.totalorder %s4179_s10, %s3088_s21  ;;  %p3095_p1 = scmp.lt.u32.totalorder %s3088_s21, %s4179_s10 }
 0x12d   : > { %p3091_p8 = pnand %p3089_p6, %p3526_p7 }
 0x12f   : > { %p3092_p9 = pneg %p3091_p8 }
 0x131   : > { %p3097_p3 = pnand %p3095_p1, %p3092_p9 }
 0x133   : > { %3100 = shalt.err (!%p3097_p3)
}
 0x134   : > { %s3101_s25 = scalar_lea.vmem %s477_s1, 16  ;;  %s3108_s23 = scalar_lea.vmem %s477_s1, 32 }
 0x135   : > { %p3102_p10 = scmp.ne.s32.totalorder %s477_s1, %s3101_s25  ;;  %p3109_p13 = scmp.lt.s32.totalorder %s477_s1, %s477_s1 }
 0x136   : > { %p3110_p0 = scmp.lt.s32.totalorder %s3108_s23, %s3101_s25 }
 0x137   : > { %p3104_p11 = pnand %p3102_p10, %p3526_p7 }
 0x138   : > { %p3111_p2 = por %p3110_p0, %p3109_p13 }
 0x139   : > { %p3105_p12 = pneg %p3104_p11 }
 0x13b   : > { %p3112_p4 = pnand %p3111_p2, %p3105_p12 }
 0x13d   : > { %3115 = shalt.err (!%p3112_p4)
}
 0x13e   : > { %2599 = dma.hbm_to_vmem [thread:$0]  (!%p3510_p5), %s4179_s10, 16, %s477_s1, [#allocation25]  }
 0x13f   : > { %s3343_s26 = smov [#allocation29]   ;;  %s3116_s15 = scalar_lea.hbm %s4181_s12, 16 }
 0x140   : > { %s500_s14 = sshll.u32 %s3343_s26, 4  ;;  %p3117_p6 = scmp.ne.s32.totalorder %s4181_s12, %s3116_s15  ;;  %s501_s14 = int_to_ptr.vmem [resolvable:$true] %s500_s14 }
 0x141   : > { %p3123_p1 = scmp.lt.u32.totalorder %s3116_s15, %s4181_s12 }
 0x142   : > { %p3119_p8 = pnand %p3117_p6, %p3526_p7 }
 0x144   : > { %p3120_p9 = pneg %p3119_p8 }
 0x146   : > { %p3125_p3 = pnand %p3123_p1, %p3120_p9 }
 0x148   : > { %3128 = shalt.err (!%p3125_p3)
}
 0x149   : > { %s3129_s1 = scalar_lea.vmem %s501_s14, 16  ;;  %s3136_s23 = scalar_lea.vmem %s501_s14, 32 }
 0x14a   : > { %p3130_p10 = scmp.ne.s32.totalorder %s501_s14, %s3129_s1  ;;  %p3137_p13 = scmp.lt.s32.totalorder %s501_s14, %s501_s14 }
 0x14b   : > { %p3138_p0 = scmp.lt.s32.totalorder %s3136_s23, %s3129_s1 }
 0x14c   : > { %p3132_p11 = pnand %p3130_p10, %p3526_p7 }
 0x14d   : > { %p3139_p2 = por %p3138_p0, %p3137_p13 }
 0x14e   : > { %p3133_p12 = pneg %p3132_p11 }
 0x150   : > { %p3140_p4 = pnand %p3139_p2, %p3133_p12 }
 0x152   : > { %3143 = shalt.err (!%p3140_p4)
}
 0x153   : > { %s4230_s26 = sld [smem:[#allocation43_spill]]  ;;  %s4231_s24 = sld [smem:[#allocation42_spill]] }
 0x154   : > { %s4232_s27 = sld [smem:[#allocation46_spill]]  ;;  %s4233_s21 = sld [smem:[#allocation41_spill]] }
 0x155   : > { %2605 = dma.hbm_to_vmem [thread:$0]  (!%p3510_p5), %s4181_s12, 16, %s501_s14, [#allocation28]  }
 0x156   : > { %s2249_s15 = sadd.s32 4294967294, %s3324_s18   ;;  %s4234_s22 = sld [smem:[#allocation40_spill]] }
 0x157   : > { %s44_s19 = sadd.s32 1, %s3316_s16  ;;  %s47_s29 = sadd.s32 1, %s3320_s17 }
 0x158   : > { %p45_p7 = scmp.ge.s32.totalorder %s44_s19, 2  ;;  %s54_s13 = sadd.s32 1, %s3304_s30 }
 0x159   : > { %p61_p6 = scmp.ne.s32.totalorder %s3304_s30, %s4230_s26  ;;  %p62_p8 = scmp.eq.s32.totalorder %s3324_s18, 0 }
 0x15a   : > { %s4278_s19 = smov (%p45_p7, %s44_s19), 0  ;;  %s4280_s29 = smov (!%p45_p7, %s47_s29), %s3320_s17 }
 0x15b   : > { %p67_p9 = scmp.ne.s32.totalorder %s4230_s26, %s4231_s24  ;;  %s4235_s14 = sld [smem:[#allocation39_spill]] }
 0x15c   : > { %p49_p5 = scmp.ge.s32.totalorder %s4280_s29, 2  ;;  %s330_s25 = ssub.s32 %s3316_s16, %s4278_s19 }
 0x15d   : > { %p3772_p1 = por %p62_p8, %p61_p6  ;;  %p4237_p3 = scmp.ne.s32.totalorder %s4232_s27, 0 }
 0x15e   : > { %s4282_s29 = smov (%p49_p5, %s4280_s29), 0  ;;  %s334_s3 = sadd.s32 1, %s4233_s21 }
 0x15f   : > { %p3778_p10 = por %p4237_p3, %p67_p9  ;;  %p344_p11 = scmp.ne.s32.totalorder %s4233_s21, %s4234_s22 }
 0x160   : > { %s51_s0 = ssub.s32 %s3320_s17, %s4282_s29  ;;  %s4239_s26 = sadd.s32 4294967295, %s3324_s18  }
 0x161   : > { %p345_p12 = scmp.eq.s32.totalorder %s4239_s26, 3  ;;  %p52_p13 = scmp.eq.s32.totalorder %s51_s0, 0 }
 0x162   : > { %s331_s24 = sor.u32 %s330_s25, %s51_s0  ;;  %p350_p4 = scmp.ne.s32.totalorder %s4234_s22, %s4235_s14 }
 0x163   : > { %p332_p0 = scmp.eq.s32.totalorder %s331_s24, 0  ;;  %p3791_p2 = por %p345_p12, %p344_p11 }
 0x164   : > { %s3796_s28 = scalar_select %p52_p13, %s3304_s30, %s54_s13  }
 0x165   : > { %s4240_s27 = scalar_select %p3791_p2, 1, 0 }
 0x166   : > { %s4284_s21 = smov (!%p332_p0, %s4233_s21), %s334_s3  ;;  %p351_p7 = scmp.eq.s32.totalorder %s2249_s15, 3 }
 0x167   : > { %p2626_p6 = scmp.lt.s32.totalorder %s3324_s18, 4  ;;  %s511_s20 = sand.u32 1, %s3304_s30  }
 0x168   : > { %p3805_p8 = por %p351_p7, %p350_p4  ;;  %s2264_s26 = sshll.u32 %s511_s20, 4 }
 0x169   : > { %s2315_s4 = sshll.u32 %s3320_s17, 8  ;;  %s4242_s24 = sld [smem:[#allocation48_spill]] }
 0x16a   : > { %s4241_s2 = scalar_select %p3805_p8, 1, 0 }
 0x16b   : > { %s515_s13 = scalar_lea.vmem [#allocation9], %s2264_s26  ;;  %p3817_p9 = pnand %p2626_p6, %p3772_p1 }
 0x16c   : > { %s522_s22 = sshll.u32 %s515_s13, 4  ;;  %s3823_s14 = scalar_lea.sflag [#allocation10], %s511_s20  ;;  %s3821_s22 = int_to_ptr.vmem [resolvable:$true] %s522_s22 }
 0x16d   : > { %p3146_p3 = pneg %p3817_p9 }
 0x16f   : > { %s3813_s5 = scalar_lea.hbm %s4242_s24, %s2315_s4  ;;  %s3149_s26 = scalar_lea.hbm %s4242_s24, 512 }
 0x170   : > { %s3144_s3 = scalar_lea.hbm %s3813_s5, 256  ;;  %p3150_p1 = scmp.lt.u32.totalorder %s3813_s5, %s4242_s24 }
 0x171   : > { %p3145_p5 = scmp.ne.s32.totalorder %s3813_s5, %s3144_s3  ;;  %p3151_p13 = scmp.lt.u32.totalorder %s3149_s26, %s3144_s3 }
 0x172   : > { %p3153_p4 = scmp.lt.u32.totalorder %s3144_s3, %s3813_s5 }
 0x173   : > { %p3147_p11 = pnand %p3146_p3, %p3145_p5  ;;  %p3152_p0 = por %p3151_p13, %p3150_p1 }
 0x175   : > { %p3148_p12 = pneg %p3147_p11  ;;  %p3154_p7 = por %p3153_p4, %p3152_p0 }
 0x177   : > { %p3155_p6 = pnand %p3154_p7, %p3148_p12 }
 0x179   : > { %3158 = shalt.err (!%p3155_p6)
}
 0x17a   : > { %s3159_s20 = scalar_lea.vmem %s3821_s22, 256  ;;  %s3344_s13 = smov [#allocation9]  }
 0x17b   : > { %p3160_p5 = scmp.ne.s32.totalorder %s3821_s22, %s3159_s20  ;;  %s3164_s4 = sshll.u32 %s3344_s13, 4  ;;  %s3165_s4 = int_to_ptr.vmem [resolvable:$false] %s3164_s4 }
 0x17c   : > { %s3166_s1 = scalar_lea.vmem %s3165_s4, 512  ;;  %p3167_p2 = scmp.lt.s32.totalorder %s3821_s22, %s3165_s4 }
 0x17d   : > { %p3162_p11 = pnand %p3160_p5, %p3146_p3  ;;  %p3168_p1 = scmp.lt.s32.totalorder %s3166_s1, %s3159_s20 }
 0x17f   : > { %p3163_p8 = pneg %p3162_p11  ;;  %p3169_p13 = por %p3168_p1, %p3167_p2 }
 0x181   : > { %p3170_p0 = pnand %p3169_p13, %p3163_p8 }
 0x183   : > { %3173 = shalt.err (!%p3170_p0)
}
 0x184   : > { %s4244_s3 = smov 8   ;;  %s4245_s26 = smov 128  }
 0x185   : > { %2609 = dma.hbm_to_vmem [thread:$0]  (!%p3817_p9), %s3813_s5, 256, %s3821_s22, %s3823_s14, %s4245_s26, %s4245_s26, %s4244_s3  }
 0x186   : > { %s4246_s25 = sld [smem:[#allocation47_spill]] }
 0x18c   : > { %p4247_p3 = scmp.ne.s32.totalorder %s4246_s25, 0 }
 0x18d   : > { %s4248_s0 = sld [smem:[#allocation43_spill]] (!%p4247_p3) }
 0x18e   : > { %534 = sbr.rel (%p4247_p3) target bundleno = 3145 (0xc49), region = 72 }
 0x193   : > { %s536_s13 = sand.u32 (!%p4247_p3), 1, %s4248_s0  }
 0x194   : > { %s2268_s4 = sshll.u32 (!%p4247_p3), %s536_s13, 4  ;;  %s537_s20 = scalar_lea.sflag (!%p4247_p3), [#allocation10], %s536_s13 }
 0x195   : > { %s3857_s1 = scalar_lea.vmem [#allocation9], %s2268_s4 }
 0x196   : > { %3251 = dma.done.wait (%p3778_p10), %s537_s20, 256  }
 0x197   : > { %3253 = vsyncadd (%p3778_p10), %s537_s20, 4294967040  ;;  %s4249_s15 = sld [smem:[#allocation46_spill]] }
 0x19d   : > { %p4250_p2 = scmp.ne.s32.totalorder %s4249_s15, 0 }
 0x19f   : > { %3255 = dma.done.wait (%p4250_p2), [#allocation13], 32  }
 0x1a0   : > { %3257 = vsyncadd (%p4250_p2), [#allocation13], 4294967264 }
 0x1a1   : > { %3259 = dma.done.wait (%p4250_p2), [#allocation16], 528  }
 0x1a2   : > { %3261 = vsyncadd (%p4250_p2), [#allocation16], 4294966768 }
 0x1a3   : > { %3263 = dma.done.wait (%p4250_p2), [#allocation19], 528  }
 0x1a4   : > { %3265 = vsyncadd (%p4250_p2), [#allocation19], 4294966768 }
 0x1a5   : > { %3267 = dma.done.wait (%p4250_p2), [#allocation22], 32  }
 0x1a6   : > { %3269 = vsyncadd (%p4250_p2), [#allocation22], 4294967264 }
 0x1a7   : > { %3271 = dma.done.wait (%p4250_p2), [#allocation25], 528  }
 0x1a8   : > { %3273 = vsyncadd (%p4250_p2), [#allocation25], 4294966768 }
 0x1a9   : > { %3275 = dma.done.wait (%p4250_p2), [#allocation28], 2064  }
 0x1aa   : > { %3277 = vsyncadd (%p4250_p2), [#allocation28], 4294965232  ;;  %s4251_s5 = sld [smem:[#allocation40_spill]]  ;;  %s4252_s3 = sld [smem:[#allocation44_spill]] }
 0x1b0   : > { %s4200_s23 = sand.u32 1, %s4251_s5   ;;  %p2282_p10 = scmp.ne.s32.totalorder %s4252_s3, 0 }
 0x1b1   : > { %s3890_s22 = sshll.u32 %s4200_s23, 3  ;;  %v635_v0 = vld [vmem:[%s3857_s1] sm:$0xff] (!%p2282_p10)  ;;  %vm639_vm0 = vcmask (!%p2282_p10), 261120   ;;  %v636_v1 = vld [vmem:[%s3857_s1 + $0x8] sm:$0xff] (!%p2282_p10)  ;;  %vm775_vm1 = vcmask (!%p2282_p10), 64512   ;;  %s3345_s26 = smov (!%p2282_p10), 96  }
 0x1b2   : > { %s630_s14 = scalar_lea.vmem [#allocation30], %s3890_s22  ;;  %634 = sbr.rel (%p2282_p10) target bundleno = 1125 (0x465), region = 128  ;;  %v640_v2 = vsel (!%p2282_p10), %vm639_vm0, %v635_v0, 0.0  ;;  %v643_v3 = vsel (!%p2282_p10), %vm639_vm0, %v636_v1, 0.0  ;;  %v683_v14 = vld [vmem:[#allocation15] sm:$0xff] (!%p2282_p10)  ;;  %v684_v15 = vld [vmem:[#allocation15 + $0x8] sm:$0xff] (!%p2282_p10) }
 0x1b3   : > { %641 = vadd.xlane.f32.xlu0 (!%p2282_p10), %v640_v2  ;;  %v685_v16 = vld [vmem:[#allocation15 + $0x10] sm:$0xff] (!%p2282_p10)  ;;  %v2473_v17 = vpack.c.bf16 (!%p2282_p10), %v684_v15, %v683_v14  ;;  %v686_v18 = vld [vmem:[#allocation15 + $0x18] sm:$0xff] (!%p2282_p10)  ;;  %v2285_v36 = vld [vmem:[#allocation17] ss:$0 sm:$0xff] (!%p2282_p10)  ;;  %s3346_s25 = smov (!%p2282_p10), 64   ;;  %s3347_s0 = smov (!%p2282_p10), 120  }
 0x1b4   : > { %v2477_v19 = vpack.c.bf16 (!%p2282_p10), %v686_v18, %v685_v16  ;;  %v2283_v27 = vld [vmem:[#allocation12] ss:$0 sm:$0xff] (!%p2282_p10)  ;;  %v2284_v29 = vld [vmem:[#allocation14] ss:$0 sm:$0xff] (!%p2282_p10)  ;;  %s3348_s13 = smov (!%p2282_p10), 88   ;;  %s3349_s4 = smov (!%p2282_p10), 56  }
 0x1b5   : > { %2474 = vmatprep.subr.bf16.mxu0 (!%p2282_p10), %v2473_v17  ;;  %s3350_s20 = smov (!%p2282_p10), 112   ;;  %s3351_s15 = smov (!%p2282_p10), 80  }
 0x1b6   : > { %2476 = vmatpush3.bf16.msra.mxu0 (!%p2282_p10), %v2473_v17  ;;  %s3352_s5 = smov (!%p2282_p10), 48   ;;  %s3353_s3 = smov (!%p2282_p10), 104  }
 0x1b7   : > { %644 = vadd.xlane.f32.xlu0 (!%p2282_p10), %v643_v3  ;;  %2478 = vmatprep.subr.bf16.mxu0 (!%p2282_p10), %v2477_v19 }
 0x1ba   : > { %2480 = vmatpush3.bf16.msra.mxu0 %v2477_v19 }
 0x240   : > { %v642_v4 = vpop.xlane.xlu0 %641 }
 0x241   : > { %v647_v5 = vmul.f32 0.03125, %v642_v4 }
 0x243   : > { %v649_v6 = vsub.f32 %v635_v0, %v647_v5 }
 0x244   : > { %v645_v7 = vpop.xlane.xlu0 %644 }
 0x245   : > { %v648_v8 = vmul.f32 0.03125, %v645_v7  ;;  %v651_v9 = vmul.f32 %v649_v6, %v649_v6 }
 0x247   : > { %v650_v10 = vsub.f32 %v636_v1, %v648_v8  ;;  %v653_v11 = vsel %vm639_vm0, %v651_v9, 0.0 }
 0x248   : > { %654 = vadd.xlane.f32.xlu1 %v653_v11 }
 0x249   : > { %v652_v12 = vmul.f32 %v650_v10, %v650_v10 }
 0x24b   : > { %v656_v13 = vsel %vm639_vm0, %v652_v12, 0.0 }
 0x24c   : > { %657 = vadd.xlane.f32.xlu1 %v656_v13 }
 0x2d5   : > { %v655_v20 = vpop.xlane.xlu1 %654 }
 0x2d6   : > { %v659_v21 = vmul.f32 0.03125, %v655_v20 }
 0x2d8   : > { %v661_v22 = vadd.f32 1e-05, %v659_v21 }
 0x2d9   : > { %v658_v23 = vpop.xlane.xlu1 %657 }
 0x2da   : > { %2772 = vrsqrt.f32 %v661_v22  ;;  %v660_v24 = vmul.f32 0.03125, %v658_v23 }
 0x2dc   : > { %v662_v25 = vadd.f32 1e-05, %v660_v24 }
 0x2de   : > { %2774 = vrsqrt.f32 %v662_v25 }
 0x2e4   : > { %v2773_v26 = vpop.eup %2772 }
 0x2e5   : > { %v665_v28 = vmul.f32 %v2773_v26, %v649_v6 }
 0x2e7   : > { %v673_v30 = vmul.f32 %v2283_v27, %v665_v28 }
 0x2e8   : > { %v2775_v31 = vpop.eup %2774 }
 0x2e9   : > { %v666_v32 = vmul.f32 %v2775_v31, %v650_v10  ;;  %v681_v33 = vadd.f32 %v2284_v29, %v673_v30 }
 0x2eb   : > { %v674_v34 = vmul.f32 %v2283_v27, %v666_v32  ;;  %2373 = vmatprep.mubr.msk.f32.mxu0 %vm639_vm0, %v681_v33 }
 0x2ed   : > { %v682_v35 = vadd.f32 %v2284_v29, %v674_v34 }
 0x2ef   : > { %2374 = vmatmul.mubr.msk.f32.vlgmr.msra.gmra.mrb[0].mxu0 %vm639_vm0, %v682_v35 }
 0x3c2   : > { %v2375_v37 = vpop.f32.mrb[0].mxu0 }
 0x3c3   : > { %v772_v38 = vadd.f32 %v2375_v37, %v2285_v36  ;;  %v766_v39 = vpop.f32.mrb[1].mxu0 }
 0x3c4   : > { %v767_v40 = vadd.f32 %v2285_v36, %v766_v39 }
 0x3c5   : > { %777 = vst.msk [vmem:[#allocation2 + $0x8] sm:$0xff] %vm775_vm1, %v772_v38  ;;  %782 = vrot.lane.b32.xlu1 %v772_v38, %s3345_s26 }
 0x3c6   : > { %776 = vst.msk [vmem:[#allocation2] sm:$0xff] %vm775_vm1, %v767_v40  ;;  %780 = vrot.lane.b32.xlu0 %v767_v40, %s3345_s26  ;;  %s3354_s26 = smov 72  }
 0x3c9   : > { %790 = vrot.lane.b32.xlu1 %v772_v38, %s3346_s25 }
 0x3ca   : > { %796 = vrot.lane.b32.xlu0 %v767_v40, %s3347_s0 }
 0x3cd   : > { %798 = vrot.lane.b32.xlu1 %v772_v38, %s3347_s0  ;;  %s3355_s0 = smov 40  }
 0x3ce   : > { %805 = vrot.lane.b32.xlu0 %v767_v40, %s3348_s13 }
 0x3d1   : > { %807 = vrot.lane.b32.xlu1 %v772_v38, %s3348_s13 }
 0x3d2   : > { %814 = vrot.lane.b32.xlu0 %v767_v40, %s3349_s4 }
 0x3d5   : > { %816 = vrot.lane.b32.xlu1 %v772_v38, %s3349_s4 }
 0x3d6   : > { %823 = vrot.lane.b32.xlu0 %v767_v40, %s3350_s20 }
 0x3d9   : > { %825 = vrot.lane.b32.xlu1 %v772_v38, %s3350_s20 }
 0x3da   : > { %832 = vrot.lane.b32.xlu0 %v767_v40, %s3351_s15 }
 0x3dd   : > { %834 = vrot.lane.b32.xlu1 %v772_v38, %s3351_s15 }
 0x3de   : > { %841 = vrot.lane.b32.xlu0 %v767_v40, %s3352_s5 }
 0x3e1   : > { %843 = vrot.lane.b32.xlu1 %v772_v38, %s3352_s5 }
 0x3e2   : > { %850 = vrot.lane.b32.xlu0 %v767_v40, %s3353_s3 }
 0x3e5   : > { %852 = vrot.lane.b32.xlu1 %v772_v38, %s3353_s3 }
 0x3e6   : > { %859 = vrot.lane.b32.xlu0 %v767_v40, %s3354_s26 }
 0x3e9   : > { %861 = vrot.lane.b32.xlu1 %v772_v38, %s3354_s26 }
 0x3ea   : > { %868 = vrot.lane.b32.xlu0 %v767_v40, %s3355_s0 }
 0x3ed   : > { %788 = vrot.lane.b32.xlu1 %v767_v40, %s3346_s25 }
 0x3f1   : > { %870 = vrot.lane.b32.xlu1 %v772_v38, %s3355_s0 }
 0x437   : > { %v783_v41 = vpop.permute.xlu1 %782 }
 0x438   : > { %787 = vst.msk [vmem:[#allocation3 + $0x8] sm:$0xff] %vm775_vm1, %v783_v41  ;;  %v781_v42 = vpop.permute.xlu0 %780 }
 0x439   : > { %786 = vst.msk [vmem:[#allocation3] sm:$0xff] %vm775_vm1, %v781_v42 }
 0x43b   : > { %v791_v43 = vpop.permute.xlu1 %790 }
 0x43c   : > { %795 = vst.msk [vmem:[#allocation4 + $0x8] sm:$0xff] %vm775_vm1, %v791_v43  ;;  %v797_v44 = vpop.permute.xlu0 %796 }
 0x43d   : > { %803 = vst.msk [vmem:[#allocation2 + $0x10] sm:$0xff] %vm775_vm1, %v797_v44 }
 0x43f   : > { %v799_v45 = vpop.permute.xlu1 %798 }
 0x440   : > { %804 = vst.msk [vmem:[#allocation2 + $0x18] sm:$0xff] %vm775_vm1, %v799_v45  ;;  %v806_v46 = vpop.permute.xlu0 %805 }
 0x441   : > { %812 = vst.msk [vmem:[#allocation3 + $0x10] sm:$0xff] %vm775_vm1, %v806_v46 }
 0x443   : > { %v808_v47 = vpop.permute.xlu1 %807 }
 0x444   : > { %813 = vst.msk [vmem:[#allocation3 + $0x18] sm:$0xff] %vm775_vm1, %v808_v47  ;;  %v815_v48 = vpop.permute.xlu0 %814 }
 0x445   : > { %821 = vst.msk [vmem:[#allocation4 + $0x10] sm:$0xff] %vm775_vm1, %v815_v48 }
 0x447   : > { %v817_v49 = vpop.permute.xlu1 %816 }
 0x448   : > { %822 = vst.msk [vmem:[#allocation4 + $0x18] sm:$0xff] %vm775_vm1, %v817_v49  ;;  %v824_v50 = vpop.permute.xlu0 %823 }
 0x449   : > { %830 = vst.msk [vmem:[#allocation2 + $0x20] sm:$0xff] %vm775_vm1, %v824_v50 }
 0x44b   : > { %v826_v51 = vpop.permute.xlu1 %825 }
 0x44c   : > { %831 = vst.msk [vmem:[#allocation2 + $0x28] sm:$0xff] %vm775_vm1, %v826_v51  ;;  %v833_v52 = vpop.permute.xlu0 %832 }
 0x44d   : > { %839 = vst.msk [vmem:[#allocation3 + $0x20] sm:$0xff] %vm775_vm1, %v833_v52 }
 0x44f   : > { %v835_v53 = vpop.permute.xlu1 %834 }
 0x450   : > { %840 = vst.msk [vmem:[#allocation3 + $0x28] sm:$0xff] %vm775_vm1, %v835_v53  ;;  %v842_v54 = vpop.permute.xlu0 %841 }
 0x451   : > { %848 = vst.msk [vmem:[#allocation4 + $0x20] sm:$0xff] %vm775_vm1, %v842_v54 }
 0x453   : > { %v844_v55 = vpop.permute.xlu1 %843 }
 0x454   : > { %849 = vst.msk [vmem:[#allocation4 + $0x28] sm:$0xff] %vm775_vm1, %v844_v55  ;;  %v851_v56 = vpop.permute.xlu0 %850 }
 0x455   : > { %857 = vst.msk [vmem:[#allocation2 + $0x30] sm:$0xff] %vm775_vm1, %v851_v56 }
 0x457   : > { %v853_v57 = vpop.permute.xlu1 %852 }
 0x458   : > { %858 = vst.msk [vmem:[#allocation2 + $0x38] sm:$0xff] %vm775_vm1, %v853_v57  ;;  %v860_v58 = vpop.permute.xlu0 %859 }
 0x459   : > { %866 = vst.msk [vmem:[#allocation3 + $0x30] sm:$0xff] %vm775_vm1, %v860_v58 }
 0x45b   : > { %v862_v59 = vpop.permute.xlu1 %861 }
 0x45c   : > { %867 = vst.msk [vmem:[#allocation3 + $0x38] sm:$0xff] %vm775_vm1, %v862_v59  ;;  %v869_v60 = vpop.permute.xlu0 %868 }
 0x45d   : > { %875 = vst.msk [vmem:[#allocation4 + $0x30] sm:$0xff] %vm775_vm1, %v869_v60 }
 0x45f   : > { %v789_v61 = vpop.permute.xlu1 %788 }
 0x460   : > { %794 = vst.msk [vmem:[#allocation4] sm:$0xff] %vm775_vm1, %v789_v61 }
 0x463   : > { %v871_v62 = vpop.permute.xlu1 %870 }
 0x464   : > { %876 = vst.msk [vmem:[#allocation4 + $0x38] sm:$0xff] %vm775_vm1, %v871_v62 }
 0x465 PF: > { %s4253_s25 = sld [smem:[#allocation44_spill]]  ;;  %vm883_vm2 = vcmask 7168   ;;  %v897_v63 = vlaneseq  ;;  %v3356_v0 = vmov -1e+30   ;;  %v3357_v2 = vmov 0.0  }
 0x466   : > { %884 = vst.msk [vmem:[#allocation6] sm:$0xff] %vm883_vm2, %v3356_v0  ;;  %885 = vst.msk [vmem:[#allocation6 + $0x8] sm:$0xff] %vm883_vm2, %v3356_v0  ;;  %vm892_vm3 = vcmask 64512  }
 0x467   : > { %886 = vst.msk [vmem:[#allocation6 + $0x10] sm:$0xff] %vm883_vm2, %v3356_v0  ;;  %887 = vst.msk [vmem:[#allocation6 + $0x18] sm:$0xff] %vm883_vm2, %v3356_v0  ;;  %v898_v6 = vshrl.u32 %v897_v63, 7 }
 0x468   : > { %888 = vst.msk [vmem:[#allocation7] sm:$0xff] %vm883_vm2, %v3357_v2  ;;  %889 = vst.msk [vmem:[#allocation7 + $0x8] sm:$0xff] %vm883_vm2, %v3357_v2 }
 0x469   : > { %890 = vst.msk [vmem:[#allocation7 + $0x10] sm:$0xff] %vm883_vm2, %v3357_v2  ;;  %891 = vst.msk [vmem:[#allocation7 + $0x18] sm:$0xff] %vm883_vm2, %v3357_v2 }
 0x46a   : > { %893 = vst.msk [vmem:[#allocation8] sm:$0xff] %vm892_vm3, %v3357_v2  ;;  %894 = vst.msk [vmem:[#allocation8 + $0x8] sm:$0xff] %vm892_vm3, %v3357_v2 }
 0x46b   : > { %s3927_s13 = sshll.u32 %s4253_s25, 3  ;;  %s901_s4 = sadd.s32 1, %s4253_s25  ;;  %895 = vst.msk [vmem:[#allocation8 + $0x10] sm:$0xff] %vm892_vm3, %v3357_v2  ;;  %896 = vst.msk [vmem:[#allocation8 + $0x18] sm:$0xff] %vm892_vm3, %v3357_v2 }
 0x46c   : > { %v899_v1 = vstv %s3927_s13  ;;  %s878_s20 = scalar_lea.vmem [#allocation2], %s3927_s13  ;;  %p2289_p8 = scmp.le.s32.totalorder %s901_s4, 0 }
 0x46d   : > { %v3944_v3 = vld [vmem:[%s878_s20] sm:$0xff]  ;;  %v3946_v4 = vld [vmem:[%s878_s20 + $0x10] sm:$0xff]  ;;  %v3961_v8 = vadd.s32 %v899_v1, %v898_v6  ;;  %s3965_s15 = smov (!%p2289_p8), 0  }
 0x46e   : > { %v3948_v5 = vld [vmem:[%s878_s20 + $0x20] sm:$0xff]  ;;  %v3959_v7 = vld [vmem:[%s878_s20 + $0x30] sm:$0xff]  ;;  %2102 = sbr.rel (%p2289_p8) target bundleno = 1877 (0x755), region = 183 }
 0x475 LB: >> { %v3358_v9 = vmov 0.0   ;;  %vm3359_vm4 = vmmov 0   ;;  %s3974_s5 = sshll.u32 %s3328_s15, 3  ;;  %v1228_v14 = vand.u32 127, %v897_v63  ;;  %v3360_v37 = vmov 0   ;;  %v1236_v38 = vld [vmem:[#allocation6] sm:$0xff]  ;;  %s3328_s15 = sphi %s3965_s15, %s905_s15  }
 0x476   : >> { %2376 = vmatprep.subr.mxu0 %v3358_v9  ;;  %2378 = vmatprep.mubr.msk.f32.mxu0 %vm3359_vm4, %v3358_v9  ;;  %s909_s3 = scalar_lea.vmem [#allocation3], %s3974_s5  ;;  %v1229_v15 = vstv %s3974_s5  ;;  %v4019_v41 = vld [vmem:[#allocation6 + $0x8] sm:$0xff]  ;;  %v1238_v42 = vld [vmem:[#allocation6 + $0x10] sm:$0xff]  ;;  %v4023_v49 = vld [vmem:[#allocation6 + $0x18] sm:$0xff]  ;;  %s4032_s26 = scalar_lea.vmem [#allocation4], %s3974_s5 }
 0x477   : >> { %2381 = vmatprep.subr.mxu1 %v3358_v9  ;;  %2383 = vmatprep.mubr.msk.f32.mxu1 %vm3359_vm4, %v3358_v9  ;;  %v910_v10 = vld [vmem:[%s909_s3] sm:$0xff]  ;;  %v911_v11 = vld [vmem:[%s909_s3 + $0x10] sm:$0xff]  ;;  %v1230_v16 = vadd.s32 %v1229_v15, %v1228_v14  ;;  %s905_s15 = sadd.s32 1, %s3328_s15  }
 0x478   : >> { %2377 = vmatpush3.xpose.msk.msra.mxu0 %vm892_vm3, %v910_v10  ;;  %2382 = vmatpush3.xpose.msk.msra.mxu1 %vm892_vm3, %v911_v11  ;;  %v912_v12 = vld [vmem:[%s909_s3 + $0x20] sm:$0xff]  ;;  %v913_v13 = vld [vmem:[%s909_s3 + $0x30] sm:$0xff]  ;;  %p904_p9 = scmp.ge.s32.totalorder %s905_s15, %s901_s4 }
 0x479   : >> { %2386 = vmatprep.subr.mxu0 %v3358_v9  ;;  %2391 = vmatprep.subr.mxu1 %v3358_v9  ;;  %vm1231_vm5 = vcmp.le.s32.totalorder %v1230_v16, %v3961_v8  ;;  %v915_v55 = vld [vmem:[%s4032_s26] sm:$0xff]  ;;  %v916_v57 = vld [vmem:[%s4032_s26 + $0x10] sm:$0xff] }
 0x47a   : >> { %2776 = vset.pattern.permute.xlu0 %v3360_v37  ;;  %2777 = vset.pattern.permute.xlu1 %v3360_v37 }
 0x47b   : >> { %2379 = vmatmul.mubr.msk.f32.vlgmr.msra.gmra.mrb[0].mxu0 %vm892_vm3, %v3944_v3  ;;  %2384 = vmatmul.mubr.msk.f32.vlgmr.msra.gmra.mrb[0].mxu1 %vm892_vm3, %v3946_v4 }
 0x47c   : >> { %2387 = vmatpush3.xpose.msk.msra.mxu0 %vm892_vm3, %v912_v12  ;;  %2388 = vmatprep.mubr.msk.f32.mxu0 %vm3359_vm4, %v3358_v9 }
 0x47d   : >> { %2392 = vmatpush3.xpose.msk.msra.mxu1 %vm892_vm3, %v913_v13  ;;  %2393 = vmatprep.mubr.msk.f32.mxu1 %vm3359_vm4, %v3358_v9  ;;  %v917_v13 = vld [vmem:[%s4032_s26 + $0x20] sm:$0xff] }
 0x47e   : >> { %2396 = vmatprep.subr.mxu0 %v3358_v9  ;;  %2401 = vmatprep.subr.mxu1 %v3358_v9 }
 0x47f   : >> { %2389 = vmatmul.mubr.msk.f32.vlgmr.msra.gmra.mrb[2].mxu0 %vm892_vm3, %v3948_v5 }
 0x480   : >> { %2394 = vmatmul.mubr.msk.f32.vlgmr.msra.gmra.mrb[2].mxu1 %vm892_vm3, %v3959_v7  ;;  %2398 = vmatprep.mubr.msk.f32.mxu0 %vm3359_vm4, %v3358_v9 }
 0x481   : >> { %2403 = vmatprep.mubr.msk.f32.mxu1 %vm3359_vm4, %v3358_v9  ;;  %2397 = vmatpush3.msra.mxu0 %v915_v55  ;;  %v1330_v55 = vld [vmem:[#allocation8 + $0x10] sm:$0xff] }
 0x482   : >> { %2406 = vmatprep.subr.mxu0 %v3358_v9  ;;  %2402 = vmatpush3.msra.mxu1 %v916_v57 }
 0x483   : >> { %2411 = vmatprep.subr.mxu1 %v3358_v9 }
 0x54e   : >> { %v991_v17 = vpop.f32.mrb[0].mxu0  ;;  %v1067_v18 = vpop.f32.mrb[0].mxu1 }
 0x54f   : >> { %v1223_v19 = vmul.f32 0.35355338, %v991_v17  ;;  %v2380_v20 = vpop.f32.mrb[1].mxu0  ;;  %v1224_v21 = vmul.f32 0.35355338, %v1067_v18  ;;  %v2385_v22 = vpop.f32.mrb[1].mxu1 }
 0x550   : >> { %v918_v17 = vld [vmem:[%s4032_s26 + $0x30] sm:$0xff] }
 0x551   : >> { %v1232_v23 = vsel %vm1231_vm5, %v1223_v19, -1e+30  ;;  %v1233_v24 = vsel %vm1231_vm5, %v1224_v21, -1e+30 }
 0x552   : >> { %v1240_v25 = vsel %vm892_vm3, %v1232_v23, -inf  ;;  %v1143_v26 = vpop.f32.mrb[2].mxu0  ;;  %v1243_v30 = vsel %vm892_vm3, %v1233_v24, -inf }
 0x553   : >> { %1241 = vmax.xlane.f32.xlu0 %v1240_v25  ;;  %v1225_v27 = vmul.f32 0.35355338, %v1143_v26  ;;  %v2390_v28 = vpop.f32.mrb[3].mxu0  ;;  %v1219_v29 = vpop.f32.mrb[2].mxu1 }
 0x554   : >> { %v1226_v31 = vmul.f32 0.35355338, %v1219_v29  ;;  %v2395_v32 = vpop.f32.mrb[3].mxu1 }
 0x555   : >> { %v1234_v33 = vsel %vm1231_vm5, %v1225_v27, -1e+30 }
 0x556   : >> { %v1246_v34 = vsel %vm892_vm3, %v1234_v33, -inf  ;;  %v1235_v35 = vsel %vm1231_vm5, %v1226_v31, -1e+30 }
 0x557   : >> { %1244 = vmax.xlane.f32.xlu0 %v1243_v30  ;;  %1247 = vmax.xlane.f32.xlu1 %v1246_v34  ;;  %v1249_v36 = vsel %vm892_vm3, %v1235_v35, -inf  ;;  %v1300_v30 = vld [vmem:[#allocation7] sm:$0xff] }
 0x55b   : >> { %1250 = vmax.xlane.f32.xlu1 %v1249_v36 }
 0x5e0   : >> { %v1242_v39 = vpop.xlane.xlu0 %1241 }
 0x5e1   : >> { %v1252_v40 = vmax.f32 %v1236_v38, %v1242_v39  ;;  %v1302_v39 = vld [vmem:[#allocation7 + $0x10] sm:$0xff] }
 0x5e3   : >> { %v1256_v43 = vsub.f32 %v1236_v38, %v1252_v40  ;;  %1656 = vst.msk [vmem:[#allocation6] sm:$0xff] %vm883_vm2, %v1252_v40  ;;  %1270 = vperm.xlu0 %2776, %v1252_v40  }
 0x5e4   : >> { %v1245_v44 = vpop.xlane.xlu0 %1244  ;;  %v1248_v45 = vpop.xlane.xlu1 %1247 }
 0x5e5   : >> { %v1260_v46 = vmul.f32 1.442695, %v1256_v43  ;;  %v1253_v47 = vmax.f32 %v4019_v41, %v1245_v44  ;;  %v1254_v48 = vmax.f32 %v1238_v42, %v1248_v45 }
 0x5e7   : >> { %2778 = vpow2.f32 %v1260_v46  ;;  %v1257_v50 = vsub.f32 %v4019_v41, %v1253_v47  ;;  %1657 = vst.msk [vmem:[#allocation6 + $0x8] sm:$0xff] %vm883_vm2, %v1253_v47  ;;  %1275 = vperm.xlu1 %2777, %v1253_v47   ;;  %v1258_v51 = vsub.f32 %v1238_v42, %v1254_v48  ;;  %1658 = vst.msk [vmem:[#allocation6 + $0x10] sm:$0xff] %vm883_vm2, %v1254_v48  ;;  %v1303_v42 = vld [vmem:[#allocation7 + $0x18] sm:$0xff]  ;;  %v1328_v47 = vld [vmem:[#allocation8] sm:$0xff] }
 0x5e8   : >> { %v1251_v52 = vpop.xlane.xlu1 %1250 }
 0x5e9   : >> { %v1255_v53 = vmax.f32 %v4023_v49, %v1251_v52  ;;  %v1264_v19 = vmul.f32 1.442695, %v1258_v51 }
 0x5eb   : >> { %1280 = vperm.xlu1 %2777, %v1254_v48   ;;  %v1259_v54 = vsub.f32 %v4023_v49, %v1255_v53  ;;  %1659 = vst.msk [vmem:[#allocation6 + $0x18] sm:$0xff] %vm883_vm2, %v1255_v53  ;;  %v1329_v49 = vld [vmem:[#allocation8 + $0x8] sm:$0xff] }
 0x5ef   : >> { %1285 = vperm.xlu1 %2777, %v1255_v53  }
 0x5f1   : >> { %v2779_v56 = vpop.eup %2778 }
 0x5f2   : >> { %v1304_v31 = vmul.f32 %v2779_v56, %v1300_v30 }
 0x5f3   : >> { %1334 = vperm.xlu1 %2777, %v2779_v56  }
 0x662   : >> { %v1271_v58 = vpop.permute.xlu0 %1270 }
 0x663   : >> { %v1288_v59 = vsub.f32 %v1232_v23, %v1271_v58  ;;  %v1262_v23 = vmul.f32 1.442695, %v1257_v50 }
 0x665   : >> { %v1292_v60 = vmul.f32 1.442695, %v1288_v59 }
 0x666   : >> { %v1276_v61 = vpop.permute.xlu1 %1275 }
 0x667   : >> { %2780 = vpow2.f32 %v1292_v60  ;;  %v1289_v62 = vsub.f32 %v1233_v24, %v1276_v61  ;;  %v1331_v60 = vld [vmem:[#allocation8 + $0x18] sm:$0xff] }
 0x669   : >> { %v1294_v0 = vmul.f32 1.442695, %v1289_v62 }
 0x66a   : >> { %v1281_v1 = vpop.permute.xlu1 %1280 }
 0x66b   : >> { %2782 = vpow2.f32 %v1294_v0  ;;  %v1290_v6 = vsub.f32 %v1234_v33, %v1281_v1  ;;  %v1301_v33 = vld [vmem:[#allocation7 + $0x8] sm:$0xff] }
 0x66d   : >> { %v1296_v10 = vmul.f32 1.442695, %v1290_v6 }
 0x66e   : >> { %v1286_v11 = vpop.permute.xlu1 %1285 }
 0x66f   : >> { %2784 = vpow2.f32 %v1296_v10  ;;  %v1291_v12 = vsub.f32 %v1235_v35, %v1286_v11 }
 0x671   : >> { %v2781_v14 = vpop.eup %2780  ;;  %v1298_v15 = vmul.f32 1.442695, %v1291_v12 }
 0x672   : >> { %2399 = vmatmul.mubr.msk.f32.vlgmr.msra.gmra.mrb[4].mxu0 %vm892_vm3, %v2781_v14  ;;  %v1308_v16 = vsel %vm892_vm3, %v2781_v14, 0.0  ;;  %v1335_v29 = vpop.permute.xlu1 %1334 }
 0x673   : >> { %2786 = vpow2.f32 %v1298_v15  ;;  %1309 = vadd.xlane.f32.xlu1 %v1308_v16  ;;  %2407 = vmatpush3.msra.mxu0 %v917_v13  ;;  %v1352_v48 = vmul.f32 %v1335_v29, %v1328_v47 }
 0x674   : >> { %2408 = vmatprep.mubr.msk.f32.mxu0 %vm3359_vm4, %v3358_v9  ;;  %2788 = vpow2.f32 %v1264_v19 }
 0x675   : >> { %v2783_v18 = vpop.eup %2782  ;;  %2790 = vpow2.f32 %v1262_v23 }
 0x676   : >> { %2404 = vmatmul.mubr.msk.f32.vlgmr.msra.gmra.mrb[4].mxu1 %vm892_vm3, %v2783_v18  ;;  %v1311_v20 = vsel %vm892_vm3, %v2783_v18, 0.0 }
 0x677   : >> { %1312 = vadd.xlane.f32.xlu0 %v1311_v20  ;;  %2412 = vmatpush3.msra.mxu1 %v918_v17 }
 0x678   : >> { %2413 = vmatprep.mubr.msk.f32.mxu1 %vm3359_vm4, %v3358_v9  ;;  %v1266_v9 = vmul.f32 1.442695, %v1259_v54 }
 0x679   : >> { %v2785_v21 = vpop.eup %2784 }
 0x67a   : >> { %2409 = vmatmul.mubr.msk.f32.vlgmr.msra.gmra.mrb[6].mxu0 %vm892_vm3, %v2785_v21  ;;  %v1314_v26 = vsel %vm892_vm3, %v2785_v21, 0.0  ;;  %2792 = vpow2.f32 %v1266_v9 }
 0x67d   : >> { %v2787_v22 = vpop.eup %2786 }
 0x67e   : >> { %2414 = vmatmul.mubr.msk.f32.vlgmr.msra.gmra.mrb[6].mxu1 %vm892_vm3, %v2787_v22  ;;  %v2789_v24 = vpop.eup %2788  ;;  %v1317_v27 = vsel %vm892_vm3, %v2787_v22, 0.0 }
 0x67f   : >> { %v2791_v25 = vpop.eup %2790  ;;  %v1306_v40 = vmul.f32 %v2789_v24, %v1302_v39 }
 0x680   : >> { %v1305_v35 = vmul.f32 %v2791_v25, %v1301_v33 }
 0x684   : >> { %1344 = vperm.xlu1 %2777, %v2789_v24   ;;  %v2793_v28 = vpop.eup %2792 }
 0x685   : >> { %v1307_v44 = vmul.f32 %v2793_v28, %v1303_v42 }
 0x68d   : >> { %1339 = vperm.xlu0 %2776, %v2791_v25  }
 0x6a8   : >> { %1315 = vadd.xlane.f32.xlu1 %v1314_v26 }
 0x6ac   : >> { %1318 = vadd.xlane.f32.xlu1 %v1317_v27 }
 0x6bd   : >> { %1349 = vperm.xlu1 %2777, %v2793_v28  }
 0x700   : >> { %v1310_v32 = vpop.xlane.xlu1 %1309 }
 0x701   : >> { %v1320_v34 = vadd.f32 %v1310_v32, %v1304_v31 }
 0x703   : >> { %1324 = vst.msk [vmem:[#allocation7] sm:$0xff] %vm883_vm2, %v1320_v34 }
 0x704   : >> { %v1313_v36 = vpop.xlane.xlu0 %1312  ;;  %v1345_v38 = vpop.permute.xlu1 %1344 }
 0x705   : >> { %v1321_v37 = vadd.f32 %v1313_v36, %v1305_v35  ;;  %v1354_v59 = vmul.f32 %v1345_v38, %v1330_v55 }
 0x707   : >> { %1325 = vst.msk [vmem:[#allocation7 + $0x8] sm:$0xff] %vm883_vm2, %v1321_v37 }
 0x70c   : >> { %v1340_v50 = vpop.permute.xlu0 %1339 }
 0x70d   : >> { %v1353_v54 = vmul.f32 %v1340_v50, %v1329_v49 }
 0x735   : >> { %v1316_v41 = vpop.xlane.xlu1 %1315 }
 0x736   : >> { %v1322_v43 = vadd.f32 %v1316_v41, %v1306_v40 }
 0x738   : >> { %1326 = vst.msk [vmem:[#allocation7 + $0x10] sm:$0xff] %vm883_vm2, %v1322_v43 }
 0x739   : >> { %v1319_v45 = vpop.xlane.xlu1 %1318 }
 0x73a   : >> { %v1323_v46 = vadd.f32 %v1319_v45, %v1307_v44 }
 0x73c   : >> { %1327 = vst.msk [vmem:[#allocation7 + $0x18] sm:$0xff] %vm883_vm2, %v1323_v46 }
 0x73d   : >> { %v1350_v61 = vpop.permute.xlu1 %1349 }
 0x73e   : >> { %v1355_v6 = vmul.f32 %v1350_v61, %v1331_v60 }
 0x745   : >> { %v1425_v51 = vpop.f32.mrb[4].mxu0 }
 0x746   : >> { %v1648_v52 = vadd.f32 %v1425_v51, %v1352_v48  ;;  %v2400_v53 = vpop.f32.mrb[5].mxu0 }
 0x748   : >> { %1652 = vst.msk [vmem:[#allocation8] sm:$0xff] %vm892_vm3, %v1648_v52 }
 0x749   : >> { %v1498_v56 = vpop.f32.mrb[4].mxu1 }
 0x74a   : >> { %v1649_v57 = vadd.f32 %v1498_v56, %v1353_v54  ;;  %v2405_v58 = vpop.f32.mrb[5].mxu1 }
 0x74c   : >> { %1653 = vst.msk [vmem:[#allocation8 + $0x8] sm:$0xff] %vm892_vm3, %v1649_v57 }
 0x74d   : >> { %v1571_v62 = vpop.f32.mrb[6].mxu0 }
 0x74e   : >> { %v1650_v0 = vadd.f32 %v1571_v62, %v1354_v59  ;;  %v2410_v1 = vpop.f32.mrb[7].mxu0  ;;  %907 = sbr.rel (!%p904_p9) target bundleno = 1141 (0x475), region = 189 }
 0x750   : >> { %1654 = vst.msk [vmem:[#allocation8 + $0x10] sm:$0xff] %vm892_vm3, %v1650_v0 }
 0x751   : >> { %v1644_v10 = vpop.f32.mrb[6].mxu1 }
 0x752   : >> { %v1651_v11 = vadd.f32 %v1644_v10, %v1355_v6  ;;  %v2415_v12 = vpop.f32.mrb[7].mxu1 }
 0x754   : >> { %1655 = vst.msk [vmem:[#allocation8 + $0x18] sm:$0xff] %vm892_vm3, %v1651_v11 }
 0x755 PF: > { %v1665_v13 = vld [vmem:[#allocation7 + $0x8] sm:$0xff]  ;;  %v1667_v14 = vld [vmem:[#allocation7 + $0x18] sm:$0xff]  ;;  %v1666_v15 = vld [vmem:[#allocation7 + $0x10] sm:$0xff]  ;;  %v3361_v16 = vmov 0   ;;  %v3362_v5 = vmov 0.0|0.0   ;;  %vm3363_vm6 = vmmov 0   ;;  %s1801_s15 = scalar_lea.vmem %s3857_s1, %s3927_s13 [#allocation9] }
 0x756   : > { %2794 = vset.pattern.permute.xlu0 %v3361_v16  ;;  %2795 = vset.pattern.permute.xlu1 %v3361_v16  ;;  %2796 = vrcp.f32 %v1665_v13  ;;  %v1664_v17 = vld [vmem:[#allocation7] sm:$0xff]  ;;  %v1717_v3 = vld [vmem:[#allocation18 + $0x8] sm:$0xff]  ;;  %v1718_v7 = vld [vmem:[#allocation18 + $0x10] sm:$0xff]  ;;  %s3364_s25 = smov 8   ;;  %s3365_s4 = smov 16   ;;  %vm1701_vm7 = vcmask 130112  }
 0x757   : > { %2798 = vrcp.f32 %v1667_v14  ;;  %v1716_v63 = vld [vmem:[#allocation18] sm:$0xff]  ;;  %2481 = vmatprep.subr.bf16.mxu1 %v3362_v5  ;;  %v1719_v8 = vld [vmem:[#allocation18 + $0x18] sm:$0xff]  ;;  %2493 = vmatprep.subr.bf16.mxu0 %v3362_v5  ;;  %v1662_v9 = vld [vmem:[#allocation8 + $0x10] sm:$0xff]  ;;  %s3366_s20 = smov 24   ;;  %vm1707_vm8 = vcmask 195712   ;;  %vm1713_vm9 = vcmask 261312  }
 0x758   : > { %2800 = vrcp.f32 %v1666_v15  ;;  %v2482_v4 = vpack.c.bf16 %v1717_v3, %v1716_v63  ;;  %v2485_v22 = vpack.c.bf16 %v1719_v8, %v1718_v7  ;;  %2424 = vmatprep.mubr.msk.f32.mxu1 %vm3363_vm6, %v3357_v2  ;;  %2470 = vmatprep.mubr.msk.f32.mxu0 %vm3363_vm6, %v3357_v2  ;;  %v1661_v23 = vld [vmem:[#allocation8 + $0x8] sm:$0xff]  ;;  %v1660_v29 = vld [vmem:[#allocation8] sm:$0xff]  ;;  %vm1727_vm10 = vcmask 261120   ;;  %v1802_v40 = vld [vmem:[%s1801_s15] sm:$0xff]  ;;  %s4255_s1 = sld [smem:[#allocation45_spill]]  ;;  %s4256_s13 = sld [smem:[#allocation44_spill]] }
 0x759   : > { %2802 = vrcp.f32 %v1664_v17  ;;  %v2303_v38 = vld [vmem:[#allocation20] ss:$0 sm:$0xff]  ;;  %v1835_v50 = vld [vmem:[#allocation24 + $0x8] sm:$0xff]  ;;  %v1836_v52 = vld [vmem:[#allocation24 + $0x10] sm:$0xff]  ;;  %s4257_s5 = sld [smem:[#allocation40_spill]]  ;;  %s4258_s15 = sld [smem:[#allocation56_spill]] }
 0x75a   : > { %2483 = vmatpush3.bf16.msra.mxu1 %v2482_v4  ;;  %v1837_v53 = vld [vmem:[#allocation24 + $0x18] sm:$0xff]  ;;  %v1927_v55 = vld [vmem:[#allocation27] sm:$0xff]  ;;  %v1928_v56 = vld [vmem:[#allocation27 + $0x8] sm:$0xff]  ;;  %p4261_p4 = scmp.ne.s32.totalorder %s4240_s27, 0 }
 0x75b   : > { %2484 = vmatprep.subr.bf16.mxu1 %v3362_v5  ;;  %v1663_v25 = vld [vmem:[#allocation8 + $0x18] sm:$0xff]  ;;  %v2491_v54 = vpack.c.bf16 %v1837_v53, %v1836_v52  ;;  %v2494_v57 = vpack.c.bf16 %v1928_v56, %v1927_v55  ;;  %v2305_v62 = vld [vmem:[#allocation21] ss:$0 sm:$0xff]  ;;  %v2306_v1 = vld [vmem:[#allocation23] ss:$0 sm:$0xff] }
 0x75c   : > { %v1929_v11 = vld [vmem:[#allocation27 + $0x10] sm:$0xff]  ;;  %v1930_v12 = vld [vmem:[#allocation27 + $0x18] sm:$0xff]  ;;  %v1931_v14 = vld [vmem:[#allocation27 + $0x20] sm:$0xff] }
 0x75d   : > { %2495 = vmatpush3.bf16.msra.mxu0 %v2494_v57  ;;  %v2497_v13 = vpack.c.bf16 %v1930_v12, %v1929_v11  ;;  %v1932_v15 = vld [vmem:[#allocation27 + $0x28] sm:$0xff]  ;;  %v1933_v17 = vld [vmem:[#allocation27 + $0x30] sm:$0xff]  ;;  %v1938_v4 = vld [vmem:[#allocation27 + $0x58] sm:$0xff] }
 0x75e   : > { %2486 = vmatpush3.bf16.msra.mxu1 %v2485_v22  ;;  %2496 = vmatprep.subr.bf16.mxu0 %v3362_v5  ;;  %v2500_v16 = vpack.c.bf16 %v1932_v15, %v1931_v14  ;;  %v1937_v3 = vld [vmem:[#allocation27 + $0x50] sm:$0xff]  ;;  %v1939_v8 = vld [vmem:[#allocation27 + $0x60] sm:$0xff]  ;;  %v1940_v22 = vld [vmem:[#allocation27 + $0x68] sm:$0xff]  ;;  %s2311_s3 = sshll.u32 %s4255_s1, 1 }
 0x75f   : > { %2487 = vmatprep.subr.bf16.mxu1 %v3362_v5  ;;  %v2509_v7 = vpack.c.bf16 %v1938_v4, %v1937_v3  ;;  %s2034_s26 = sadd.s32 %s4256_s13, %s2311_s3  ;;  %s4259_s23 = smov %s4258_s15 }
 0x760   : > { %v2797_v18 = vpop.eup %2796  ;;  %s2312_s0 = sshll.u32 %s2034_s26, 7  ;;  %s4260_s1 = sand.u32 1, %s4257_s5  }
 0x761   : > { %v2799_v19 = vpop.eup %2798  ;;  %1679 = vperm.xlu0 %2794, %v2797_v18   ;;  %2498 = vmatpush3.bf16.msra.mxu0 %v2497_v13  ;;  %v1934_v18 = vld [vmem:[#allocation27 + $0x38] sm:$0xff]  ;;  %s4102_s6 = scalar_lea.hbm %s4258_s15, %s2312_s0  ;;  %s2023_s13 = scalar_lea.sflag [#allocation11], %s4260_s1 }
 0x762   : > { %v2801_v20 = vpop.eup %2800  ;;  %1689 = vperm.xlu1 %2795, %v2799_v19   ;;  %2499 = vmatprep.subr.bf16.mxu0 %v3362_v5  ;;  %v2503_v19 = vpack.c.bf16 %v1934_v18, %v1933_v17  ;;  %s3367_s26 = smov [#allocation30]  }
 0x763   : > { %v2803_v21 = vpop.eup %2802  ;;  %s3178_s7 = sshll.u32 %s3367_s26, 4  ;;  %s3179_s7 = int_to_ptr.vmem [resolvable:$false] %s3178_s7 }
 0x764   : > { %s3180_s0 = scalar_lea.vmem %s3179_s7, 256 }
 0x765   : > { %1684 = vperm.xlu0 %2794, %v2801_v20   ;;  %2501 = vmatpush3.bf16.msra.mxu0 %v2500_v16  ;;  %v1935_v20 = vld [vmem:[#allocation27 + $0x40] sm:$0xff] }
 0x766   : > { %1674 = vperm.xlu1 %2795, %v2803_v21   ;;  %2502 = vmatprep.subr.bf16.mxu0 %v3362_v5  ;;  %v1936_v21 = vld [vmem:[#allocation27 + $0x48] sm:$0xff] }
 0x767   : > { %v2506_v63 = vpack.c.bf16 %v1936_v21, %v1935_v20 }
 0x769   : > { %2504 = vmatpush3.bf16.msra.mxu0 %v2503_v19 }
 0x76a   : > { %2505 = vmatprep.subr.bf16.mxu0 %v3362_v5 }
 0x76d   : > { %2507 = vmatpush3.bf16.msra.mxu0 %v2506_v63 }
 0x76e   : > { %2508 = vmatprep.subr.bf16.mxu0 %v3362_v5 }
 0x771   : > { %2510 = vmatpush3.bf16.msra.mxu0 %v2509_v7 }
 0x772   : > { %2511 = vmatprep.subr.bf16.mxu0 %v3362_v5 }
 0x7e0   : > { %v1680_v24 = vpop.permute.xlu0 %1679 }
 0x7e1   : > { %v1693_v26 = vmul.f32 %v1680_v24, %v1661_v23  ;;  %v1690_v27 = vpop.permute.xlu1 %1689  ;;  %v2512_v23 = vpack.c.bf16 %v1940_v22, %v1939_v8  ;;  %v1941_v24 = vld [vmem:[#allocation27 + $0x70] sm:$0xff] }
 0x7e2   : > { %v1695_v28 = vmul.f32 %v1690_v27, %v1663_v25  ;;  %v1942_v25 = vld [vmem:[#allocation27 + $0x78] sm:$0xff] }
 0x7e3   : > { %1698 = vrot.lane.b32.xlu0 %v1693_v26, %s3364_s25  ;;  %2513 = vmatpush3.bf16.msra.mxu0 %v2512_v23  ;;  %v2515_v26 = vpack.c.bf16 %v1942_v25, %v1941_v24  ;;  %v2307_v27 = vld [vmem:[#allocation26] ss:$0 sm:$0xff]  ;;  %s2038_s25 = sshll.u32 %s630_s14, 4  ;;  %s4104_s25 = int_to_ptr.vmem [resolvable:$true] %s2038_s25 }
 0x7e4   : > { %v1685_v30 = vpop.permute.xlu0 %1684  ;;  %2514 = vmatprep.subr.bf16.mxu0 %v3362_v5  ;;  %s3174_s3 = scalar_lea.vmem %s4104_s25, 128  ;;  %p3181_p5 = scmp.lt.s32.totalorder %s4104_s25, %s3179_s7 }
 0x7e5   : > { %v1694_v31 = vmul.f32 %v1685_v30, %v1662_v9  ;;  %v1675_v32 = vpop.permute.xlu1 %1674  ;;  %p3175_p12 = scmp.ne.s32.totalorder %s4104_s25, %s3174_s3  ;;  %p3182_p11 = scmp.lt.s32.totalorder %s3180_s0, %s3174_s3 }
 0x7e6   : > { %v1692_v33 = vmul.f32 %v1675_v32, %v1660_v29 }
 0x7e7   : > { %1704 = vrot.lane.b32.xlu1 %v1694_v31, %s3365_s4  ;;  %1710 = vrot.lane.b32.xlu0 %v1695_v28, %s3366_s20  ;;  %p3176_p7 = pnand %p3175_p12, %p4261_p4  ;;  %p3183_p1 = por %p3182_p11, %p3181_p5 }
 0x7e8   : > { %1696 = vst.msk [vmem:[#allocation5] sm:$0xff] %vm892_vm3, %v1692_v33  ;;  %2516 = vmatpush3.bf16.msra.mxu0 %v2515_v26 }
 0x7e9   : > { %p3177_p6 = pneg %p3176_p7 }
 0x7eb   : > { %p3184_p13 = pnand %p3183_p1, %p3177_p6 }
 0x855   : > { %v1699_v34 = vpop.permute.xlu0 %1698 }
 0x856   : > { %1702 = vst.msk [vmem:[#allocation5] sm:$0xff] %vm1701_vm7, %v1699_v34 }
 0x859   : > { %v1705_v35 = vpop.permute.xlu1 %1704  ;;  %v1711_v36 = vpop.permute.xlu0 %1710 }
 0x85a   : > { %1708 = vst.msk [vmem:[#allocation5] sm:$0xff] %vm1707_vm8, %v1705_v35 }
 0x85b   : > { %1714 = vst.msk [vmem:[#allocation5] sm:$0xff] %vm1713_vm9, %v1711_v36 }
 0x862   : > { %v1715_v37 = vld [vmem:[#allocation5] sm:$0xff] }
 0x863   : > { %2425 = vmatmul.mubr.msk.f32.vlgmr.msra.gmra.mrb[0].mxu1 %vm1727_vm10, %v1715_v37 }
 0x864   : > { %2435 = vmatprep.mubr.msk.f32.mxu1 %vm3363_vm6, %v3357_v2  ;;  %v1834_v2 = vld [vmem:[#allocation24] sm:$0xff] }
 0x865   : > { %v2488_v51 = vpack.c.bf16 %v1835_v50, %v1834_v2 }
 0x867   : > { %2489 = vmatpush3.bf16.msra.mxu1 %v2488_v51 }
 0x868   : > { %2490 = vmatprep.subr.bf16.mxu1 %v3362_v5 }
 0x86b   : > { %2492 = vmatpush3.bf16.msra.mxu1 %v2491_v54 }
 0x936   : > { %v1797_v39 = vpop.f32.mrb[0].mxu1 }
 0x937   : > { %v1798_v41 = vadd.f32 %v2303_v38, %v1797_v39  ;;  %v2426_v42 = vpop.f32.mrb[1].mxu1  ;;  %v2309_v38 = vld [vmem:[#allocation29] ss:$0 sm:$0xff] }
 0x939   : > { %v4079_v43 = vadd.f32 %v1802_v40, %v1798_v41 }
 0x93b   : > { %v1806_v44 = vsel %vm1727_vm10, %v4079_v43, 0.0 }
 0x93c   : > { %1807 = vadd.xlane.f32.xlu1 %v1806_v44 }
 0x9c9   : > { %v1808_v45 = vpop.xlane.xlu1 %1807 }
 0x9ca   : > { %v1810_v46 = vmul.f32 0.03125, %v1808_v45 }
 0x9cc   : > { %v1811_v47 = vsub.f32 %v4079_v43, %v1810_v46 }
 0x9ce   : > { %v1812_v48 = vmul.f32 %v1811_v47, %v1811_v47 }
 0x9d0   : > { %v1813_v49 = vsel %vm1727_vm10, %v1812_v48, 0.0 }
 0x9d1   : > { %1814 = vadd.xlane.f32.xlu0 %v1813_v49 }
 0xa5e   : > { %v1815_v58 = vpop.xlane.xlu0 %1814 }
 0xa5f   : > { %v1816_v59 = vmul.f32 0.03125, %v1815_v58 }
 0xa61   : > { %v1817_v60 = vadd.f32 1e-05, %v1816_v59 }
 0xa63   : > { %2804 = vrsqrt.f32 %v1817_v60 }
 0xa6d   : > { %v2805_v61 = vpop.eup %2804 }
 0xa6e   : > { %v1819_v0 = vmul.f32 %v2805_v61, %v1811_v47 }
 0xa70   : > { %v1826_v6 = vmul.f32 %v2305_v62, %v1819_v0 }
 0xa72   : > { %v1833_v10 = vadd.f32 %v2306_v1, %v1826_v6 }
 0xa74   : > { %2436 = vmatmul.mubr.msk.f32.vlgmr.msra.gmra.mrb[2].mxu1 %vm1727_vm10, %v1833_v10 }
 0xb47   : > { %v1914_v9 = vpop.f32.mrb[2].mxu1 }
 0xb48   : > { %v1915_v28 = vadd.f32 %v2307_v27, %v1914_v9  ;;  %v2437_v29 = vpop.f32.mrb[3].mxu1 }
 0xb4a   : > { %v1919_v30 = vmul.f32 0.044715, %v1915_v28  ;;  %v1918_v36 = vmul.f32 0.5, %v1915_v28 }
 0xb4c   : > { %v1920_v31 = vmul.f32 %v1919_v30, %v1915_v28 }
 0xb4e   : > { %v1921_v32 = vmul.f32 %v1920_v31, %v1915_v28 }
 0xb50   : > { %v1922_v33 = vadd.f32 %v1921_v32, %v1915_v28 }
 0xb52   : > { %v1923_v34 = vmul.f32 0.7978846, %v1922_v33 }
 0xb54   : > { %2806 = vtanh.f32 %v1923_v34 }
 0xb5e   : > { %v2807_v35 = vpop.eup %2806 }
 0xb5f   : > { %v1925_v37 = vadd.f32 1.0, %v2807_v35 }
 0xb61   : > { %v1926_v5 = vmul.f32 %v1925_v37, %v1918_v36 }
 0xb63   : > { %2471 = vmatmul.mubr.f32.vlgmr.msra.gmra.mrb[0].mxu0 %v1926_v5 }
 0xc36   : > { %v2016_v39 = vpop.f32.mrb[0].mxu0 }
 0xc37   : > { %v2017_v40 = vadd.f32 %v2309_v38, %v2016_v39  ;;  %v2472_v41 = vpop.f32.mrb[1].mxu0 }
 0xc39   : > { %v2020_v42 = vadd.f32 %v2017_v40, %v4079_v43 }
 0xc3b   : > { %2021 = vst.msk [vmem:[%s630_s14] sm:$0xff] %vm1727_vm10, %v2020_v42 }
 0xc3c   : > { %3187 = shalt.err (!%p3184_p13)
}
 0xc3d   : > { %s3188_s22 = scalar_lea.hbm %s4102_s6, 128  ;;  %s3192_s4 = scalar_lea.hbm %s4259_s23, 512 }
 0xc3e   : > { %p3189_p0 = scmp.ne.s32.totalorder %s4102_s6, %s3188_s22  ;;  %p3193_p10 = scmp.lt.u32.totalorder %s4102_s6, %s4259_s23 }
 0xc3f   : > { %p3194_p8 = scmp.lt.u32.totalorder %s3192_s4, %s3188_s22  ;;  %p3196_p12 = scmp.lt.u32.totalorder %s3188_s22, %s4102_s6 }
 0xc40   : > { %p3190_p3 = pnand %p3189_p0, %p4261_p4 }
 0xc41   : > { %p3195_p9 = por %p3194_p8, %p3193_p10 }
 0xc42   : > { %p3191_p2 = pneg %p3190_p3 }
 0xc43   : > { %p3197_p7 = por %p3196_p12, %p3195_p9 }
 0xc45   : > { %p3198_p6 = pnand %p3197_p7, %p3191_p2 }
 0xc47   : > { %3201 = shalt.err (!%p3198_p6)
}
 0xc48   : > { %2567 = dma.vmem_to_hbm [thread:$0]  (%p4261_p4), %s4104_s25, 128, %s4102_s6, %s2023_s13  }
 0xc49 PF: > { %s4262_s15 = sld [smem:[#allocation39_spill]]  ;;  %p2639_p5 = scmp.ge.s32.totalorder %s3324_s18, 2 }
 0xc4a   : > { %p4263_p11 = scmp.ne.s32.totalorder %s4241_s2, 0 }
 0xc4c   : > { %p2611_p1 = pnand %p2639_p5, %p4263_p11 }
 0xc4f   : > { %s2050_s1 = sand.u32 1, %s4262_s15  }
 0xc50   : > { %s2051_s3 = scalar_lea.sflag [#allocation11], %s2050_s1 }
 0xc51   : > { %3279 = dma.done.wait (!%p2611_p1), %s2051_s3, 128  }
 0xc52   : > { %3281 = vsyncadd (!%p2611_p1), %s2051_s3, 4294967168  ;;  %s35_s18 = sadd.s32 1, %s3324_s18   ;;  %s4264_s25 = sld [smem:[#allocation40_spill]] }
 0xc53   : > { %p32_p13 = scmp.ge.s32.totalorder %s35_s18, 6   ;;  %s4265_s26 = sld [smem:[#allocation41_spill]] }
 0xc54   : > { %s4266_s0 = sld [smem:[#allocation43_spill]]  ;;  %s4267_s6 = smov %s3796_s28 }
 0xc55   : > { %s4268_s13 = smov %s4282_s29  ;;  %s4269_s27 = smov %s4284_s21 }
 0xc56   : > { %s4271_s29 = smov %s3304_s30  ;;  %s4272_s30 = smov %s4267_s6 }
 0xc57   : > { %s4273_s14 = smov %s3316_s16  ;;  %s4274_s15 = smov %s3320_s17 }
 0xc58   : > { %s4275_s16 = smov %s4278_s19  ;;  %s4276_s17 = smov %s4268_s13 }
 0xc59   :  { %34 = sbr.rel (!%p32_p13) target bundleno = 25 (0x19), region = 200 }
 0xc5a   : > { %s4270_s28 = smov %s4266_s0 }
 0xc60   :  { %2056 = vsyncpa [#allocation10], 1 }
 0xc61   :  { %2058 = vsyncpa [#allocation10 + $0x1], 1 }
 0xc62   :  { %2059 = vsyncpa [#allocation13], 1 }
 0xc63   :  { %2060 = vsyncpa [#allocation16], 1 }
 0xc64   :  { %2061 = vsyncpa [#allocation19], 1 }
 0xc65   :  { %2062 = vsyncpa [#allocation22], 1 }
 0xc66   :  { %2063 = vsyncpa [#allocation25], 1 }
 0xc67   :  { %2064 = vsyncpa [#allocation28], 1 }
 0xc68   :  { %2065 = vsyncpa [#allocation11], 1 }
 0xc69   :  { %2067 = vsyncpa [#allocation11 + $0x1], 1 }

</bundles_post_ra>
